<compile_context>
chip_gen: v7x
topology: tpu7x:2x2x1
jax: 0.10.0
libtpu: 0.0.40
codegen_flags: <defaults>
</compile_context>

<pallas_src>
import functools

import jax
import jax.numpy as jnp
from jax.experimental import pallas as pl
from jax.experimental.pallas import tpu as pltpu

# Hyperparameters: RNNClassifier(input_size=16, hidden_size=32, num_layers=2,
#                                output_size=4, model_arch='lstm', dropout=0.0)
INPUT_SIZE = 16
HIDDEN_SIZE = 32
NUM_LAYERS = 2
OUTPUT_SIZE = 4
BATCH = 2
SEQ_LEN = 8


def _slab_rows(input_size, hidden_size):
    """Row offsets of each parameter inside the packed (rows, 4H) weight slab.
    Sections start on multiples of 16 rows (one full bf16 sublane tile)."""
    def up16(n):
        return -(-n // 16) * 16
    r = {}
    r["w_ih0"] = 0
    r["w_hh0"] = up16(r["w_ih0"] + input_size)
    r["w_ih1"] = up16(r["w_hh0"] + hidden_size)
    r["w_hh1"] = up16(r["w_ih1"] + hidden_size)
    r["b0"] = up16(r["w_hh1"] + hidden_size)
    r["b1"] = r["b0"] + 16
    r["w_fc"] = r["b1"] + 16
    r["b_fc"] = up16(r["w_fc"] + hidden_size)
    total = r["b_fc"] + 16
    return r, total


def _lstm_kernel(x_ref, w_ref, scale_ref, out_ref, *, B, T, I, H, O, rows):
    """Grid-less: whole problem resident in VMEM, both recurrences unrolled
    in-kernel, (h, c) carried in vregs, time-invariant projections batched."""
    f32 = jnp.float32
    bf16 = jnp.bfloat16

    # Static, sublane-aligned views into the packed weight slab (one DMA).
    w_ih0 = w_ref[rows["w_ih0"]:rows["w_ih0"] + I, :]            # (I, 4H) bf16
    w_hh0 = w_ref[rows["w_hh0"]:rows["w_hh0"] + H, :]            # (H, 4H) bf16
    w_ih1 = w_ref[rows["w_ih1"]:rows["w_ih1"] + H, :]            # (H, 4H) bf16
    w_hh1 = w_ref[rows["w_hh1"]:rows["w_hh1"] + H, :]            # (H, 4H) bf16
    b0 = w_ref[rows["b0"]:rows["b0"] + 1, :].astype(f32)         # (1, 4H)
    b1 = w_ref[rows["b1"]:rows["b1"] + 1, :].astype(f32)         # (1, 4H)
    w_fc = w_ref[rows["w_fc"]:rows["w_fc"] + H, :]               # (H, 4H) bf16, zero past O
    b_fc = w_ref[rows["b_fc"]:rows["b_fc"] + 1, :].astype(f32)   # (1, 4H), zero past O

    def gates_to_state(gates, c_prev):
        # Gate columns pre-reordered to (i, f, o, g): one sigmoid slab, one tanh.
        sig = jax.nn.sigmoid(gates[:, :3 * H])
        g = jnp.tanh(gates[:, 3 * H:])
        i = sig[:, :H]
        f = sig[:, H:2 * H]
        o = sig[:, 2 * H:3 * H]
        c_new = f * c_prev + i * g
        h_new = o * jnp.tanh(c_new)
        return h_new, c_new

    # ---- Layer 0: batched input projection (1 MXU push) + recurrence ----
    x = x_ref[...]                                               # (T*B, I) bf16
    xproj0 = jnp.dot(x, w_ih0, preferred_element_type=f32) + b0  # (T*B, 4H) f32

    h0 = jnp.zeros((B, H), f32)
    c0 = jnp.zeros((B, H), f32)
    h0_steps = []
    for t in range(T):                                           # static unroll (T = 8)
        rec = jnp.dot(h0.astype(bf16), w_hh0, preferred_element_type=f32)
        h0, c0 = gates_to_state(xproj0[t * B:(t + 1) * B, :] + rec, c0)
        h0_steps.append(h0)

    # ---- Layer 1: batched input projection over all T + recurrence ----
    h0_all = jnp.concatenate(h0_steps, axis=0)                   # (T*B, H) f32
    hproj1 = jnp.dot(h0_all.astype(bf16), w_ih1,
                     preferred_element_type=f32) + b1            # (T*B, 4H) f32

    h1 = jnp.zeros((B, H), f32)
    c1 = jnp.zeros((B, H), f32)
    for t in range(T):
        rec = jnp.dot(h1.astype(bf16), w_hh1, preferred_element_type=f32)
        h1, c1 = gates_to_state(hproj1[t * B:(t + 1) * B, :] + rec, c1)

    # ---- Epilogue: fc, per-row scale (scale*(h1@W) == (scale*h1)@W), sigmoid ----
    row = jax.lax.broadcasted_iota(jnp.int32, (B, 1), 0)
    scale = jnp.zeros((B, 1), f32)
    for b in range(B):
        scale = jnp.where(row == b, scale_ref[b], scale)         # SMEM scalars -> (B, 1)

    logits = jnp.dot(h1.astype(bf16), w_fc, preferred_element_type=f32)
    logits = logits * scale + b_fc                               # (B, 4H); lanes >= O unused
    out_ref[...] = jax.nn.sigmoid(logits[:, :O])


def prepare_kernel_params(params):
    """One-time repack of PyTorch-layout params:
      * gate columns (i,f,g,o) -> (i,f,o,g),
      * bias_ih + bias_hh summed per layer,
      * everything packed into ONE (rows, 4H) bf16 slab with 16-row-aligned
        sections (single kernel-entry DMA; fc weight/bias zero-padded to 128 lanes)."""
    I, H, O = INPUT_SIZE, HIDDEN_SIZE, OUTPUT_SIZE
    rows, total = _slab_rows(I, H)

    def reorder(w):                        # (..., 4H): (i,f,g,o) -> (i,f,o,g)
        i, f, g, o = jnp.split(w, 4, axis=-1)
        return jnp.concatenate([i, f, o, g], axis=-1)

    slab = jnp.zeros((total, 4 * H), jnp.float32)

    def put(s, row, block):
        return s.at[row:row + block.shape[0], :block.shape[1]].set(block)

    slab = put(slab, rows["w_ih0"], reorder(params["w_ih0"]))
    slab = put(slab, rows["w_hh0"], reorder(params["w_hh0"]))
    slab = put(slab, rows["w_ih1"], reorder(params["w_ih1"]))
    slab = put(slab, rows["w_hh1"], reorder(params["w_hh1"]))
    slab = put(slab, rows["b0"], reorder(params["b_ih0"] + params["b_hh0"]))
    slab = put(slab, rows["b1"], reorder(params["b_ih1"] + params["b_hh1"]))
    slab = put(slab, rows["w_fc"], params["w_fc"])
    slab = put(slab, rows["b_fc"], params["b_fc"])
    return {"w_slab": slab.astype(jnp.bfloat16), "rows": rows}


def rnn_classifier_forward(x, lengths, mask, kparams):
    """x: (B, T, I) f32 batch-first, lengths: (B,) i32 with max(lengths) == T,
    mask: (B, T).  Returns sigmoid(fc(masked last hidden)) of shape (B, O)."""
    B, T, I = x.shape
    H, O = HIDDEN_SIZE, OUTPUT_SIZE

    # pad_packed zeroing of the last padded timestep, combined with the mask.
    valid_last = (lengths >= T).astype(jnp.float32)
    scale = mask[:, -1].astype(jnp.float32) * valid_last         # (B,)

    # Time-major, flattened to (T*B, I): the batched layer-0 projection and the
    # per-step slices become contiguous sublane blocks.  bf16 MXU operands.
    x_tm = jnp.transpose(x, (1, 0, 2)).reshape(T * B, I).astype(jnp.bfloat16)

    kernel = functools.partial(_lstm_kernel, B=B, T=T, I=I, H=H, O=O,
                               rows=kparams["rows"])

    # Grid-less: total footprint ~50 KB, everything resident in VMEM.
    return pl.pallas_call(
        kernel,
        out_shape=jax.ShapeDtypeStruct((B, O), jnp.float32),
        in_specs=[
            pl.BlockSpec(memory_space=pltpu.MemorySpace.VMEM),   # x (time-major)
            pl.BlockSpec(memory_space=pltpu.MemorySpace.VMEM),   # packed weight slab
            pl.BlockSpec(memory_space=pltpu.MemorySpace.SMEM),   # per-batch scale scalars
        ],
        out_specs=pl.BlockSpec(memory_space=pltpu.MemorySpace.VMEM),
    )(x_tm, kparams["w_slab"], scale)


def init_params(key):
    """Deterministic params matching the module init: LSTM weights
    xavier_normal_, LSTM biases 0.0 (init_lstm_weights); fc uses a
    Linear-default-style uniform bound.  Weights stored transposed as
    (in, out); LSTM gate order is PyTorch's (i, f, g, o)."""
    ks = jax.random.split(key, 6)
    H, I, O = HIDDEN_SIZE, INPUT_SIZE, OUTPUT_SIZE

    def xavier_t(k, torch_shape):
        fan_out, fan_in = torch_shape                  # torch weight is (out, in)
        std = (2.0 / (fan_in + fan_out)) ** 0.5
        return (std * jax.random.normal(k, torch_shape, dtype=jnp.float32)).T

    bound = 1.0 / (H ** 0.5)
    zeros_b = jnp.zeros((1, 4 * H), jnp.float32)
    return {
        "w_ih0": xavier_t(ks[0], (4 * H, I)),
        "w_hh0": xavier_t(ks[1], (4 * H, H)),
        "b_ih0": zeros_b, "b_hh0": zeros_b,
        "w_ih1": xavier_t(ks[2], (4 * H, H)),
        "w_hh1": xavier_t(ks[3], (4 * H, H)),
        "b_ih1": zeros_b, "b_hh1": zeros_b,
        "w_fc": jax.random.uniform(ks[4], (O, H), jnp.float32, -bound, bound).T,
        "b_fc": jax.random.uniform(ks[5], (1, O), jnp.float32, -bound, bound),
    }


def reference_forward(x, lengths, mask, params):
    """Pure-JAX f32 reference matching the PyTorch forward (for verification)."""
    B, T, _ = x.shape
    H = HIDDEN_SIZE

    def run_layer(inp, wih, whh, b):
        def step(carry, x_t):
            h, c = carry
            gates = x_t @ wih + h @ whh + b
            i, f, g, o = jnp.split(gates, 4, axis=-1)
            i, f, o = jax.nn.sigmoid(i), jax.nn.sigmoid(f), jax.nn.sigmoid(o)
            g = jnp.tanh(g)
            c = f * c + i * g
            h = o * jnp.tanh(c)
            return (h, c), h
        init = (jnp.zeros((B, H), jnp.float32), jnp.zeros((B, H), jnp.float32))
        _, hs = jax.lax.scan(step, init, jnp.transpose(inp, (1, 0, 2)))
        return jnp.transpose(hs, (1, 0, 2))

    out = run_layer(x, params["w_ih0"], params["w_hh0"],
                    (params["b_ih0"] + params["b_hh0"])[0])
    out = run_layer(out, params["w_ih1"], params["w_hh1"],
                    (params["b_ih1"] + params["b_hh1"])[0])
    tsteps = jnp.arange(T)[None, :, None]
    out = out * (tsteps < lengths[:, None, None]).astype(out.dtype)  # pad_packed zeros
    out = out * mask[..., None].astype(out.dtype)
    last = out[:, -1, :]
    return jax.nn.sigmoid(last @ params["w_fc"] + params["b_fc"][0])


if __name__ == "__main__":
    key = jax.random.PRNGKey(0)
    pkey, xkey = jax.random.split(key)

    params = init_params(pkey)
    kparams = prepare_kernel_params(params)   # one-time fuse/reorder/pack of weights

    x = jax.random.normal(xkey, (BATCH, SEQ_LEN, INPUT_SIZE), dtype=jnp.float32)
    lengths = jnp.array([SEQ_LEN, 5], dtype=jnp.int32)        # max(lengths) == SEQ_LEN
    mask = (jnp.arange(SEQ_LEN)[None, :] < lengths[:, None]).astype(jnp.float32)

    out = rnn_classifier_forward(x, lengths, mask, kparams)
    out = jax.block_until_ready(out)

    ref = reference_forward(x, lengths, mask, params)
    assert out.shape == (BATCH, OUTPUT_SIZE)
    # Tolerance relaxed for bf16 MXU operands (f32 accumulation / state math).
    assert jnp.allclose(out, ref, atol=2e-2, rtol=2e-2), (out, ref)

    print("KERNEL_OK")
</pallas_src>

<mosaic_0001>
module attributes {stable_mosaic.version = 11 : i64} {
  func.func @_lstm_kernel(%arg0: memref<16x16xbf16, #tpu.memory_space<vmem>>, %arg1: memref<192x128xbf16, #tpu.memory_space<vmem>>, %arg2: memref<2xf32, #tpu.memory_space<smem>>, %arg3: memref<2x4xf32, #tpu.memory_space<vmem>>) attributes {dimension_semantics = [], scalar_prefetch = 0 : i64, scratch_operands = 0 : i64, tpu.core_type = #tpu.core_type<tc>} {
    %c0 = arith.constant 0 : index
    %c0_0 = arith.constant 0 : index
    %0 = vector.load %arg1[%c0, %c0_0] : memref<192x128xbf16, #tpu.memory_space<vmem>>, vector<16x128xbf16>
    %c16 = arith.constant 16 : index
    %c0_1 = arith.constant 0 : index
    %1 = vector.load %arg1[%c16, %c0_1] : memref<192x128xbf16, #tpu.memory_space<vmem>>, vector<32x128xbf16>
    %c48 = arith.constant 48 : index
    %c0_2 = arith.constant 0 : index
    %2 = vector.load %arg1[%c48, %c0_2] : memref<192x128xbf16, #tpu.memory_space<vmem>>, vector<32x128xbf16>
    %c80 = arith.constant 80 : index
    %c0_3 = arith.constant 0 : index
    %3 = vector.load %arg1[%c80, %c0_3] : memref<192x128xbf16, #tpu.memory_space<vmem>>, vector<32x128xbf16>
    %c112 = arith.constant 112 : index
    %c0_4 = arith.constant 0 : index
    %4 = vector.load %arg1[%c112, %c0_4] : memref<192x128xbf16, #tpu.memory_space<vmem>>, vector<1x128xbf16>
    %5 = arith.extf %4 : vector<1x128xbf16> to vector<1x128xf32>
    %c128 = arith.constant 128 : index
    %c0_5 = arith.constant 0 : index
    %6 = vector.load %arg1[%c128, %c0_5] : memref<192x128xbf16, #tpu.memory_space<vmem>>, vector<1x128xbf16>
    %7 = arith.extf %6 : vector<1x128xbf16> to vector<1x128xf32>
    %c144 = arith.constant 144 : index
    %c0_6 = arith.constant 0 : index
    %8 = vector.load %arg1[%c144, %c0_6] : memref<192x128xbf16, #tpu.memory_space<vmem>>, vector<32x128xbf16>
    %c176 = arith.constant 176 : index
    %c0_7 = arith.constant 0 : index
    %9 = vector.load %arg1[%c176, %c0_7] : memref<192x128xbf16, #tpu.memory_space<vmem>>, vector<1x128xbf16>
    %10 = arith.extf %9 : vector<1x128xbf16> to vector<1x128xf32>
    %c0_8 = arith.constant 0 : index
    %c0_9 = arith.constant 0 : index
    %11 = vector.load %arg0[%c0_8, %c0_9] : memref<16x16xbf16, #tpu.memory_space<vmem>>, vector<16x16xbf16>
    %cst = arith.constant dense<0.000000e+00> : vector<16x128xf32>
    %12 = tpu.matmul %11, %0, %cst {dimension_numbers = #tpu.dot_dimension_numbers<[1], [0], [0], [1], [0, 0, 1, 1], [], []>} : vector<16x16xbf16>, vector<16x128xbf16>, vector<16x128xf32> -> vector<16x128xf32>
    %13 = vector.broadcast %5 : vector<1x128xf32> to vector<16x128xf32>
    %14 = arith.addf %12, %13 : vector<16x128xf32>
    %cst_10 = arith.constant 0.000000e+00 : f32
    %15 = vector.broadcast %cst_10 : f32 to vector<2x32xf32>
    %cst_11 = arith.constant 0.000000e+00 : f32
    %16 = vector.broadcast %cst_11 : f32 to vector<2x32xf32>
    %17 = arith.truncf %15 : vector<2x32xf32> to vector<2x32xbf16>
    %cst_12 = arith.constant dense<0.000000e+00> : vector<2x128xf32>
    %18 = tpu.matmul %17, %1, %cst_12 {dimension_numbers = #tpu.dot_dimension_numbers<[1], [0], [0], [1], [0, 0, 1, 1], [], []>} : vector<2x32xbf16>, vector<32x128xbf16>, vector<2x128xf32> -> vector<2x128xf32>
    %19 = vector.extract_strided_slice %14 {offsets = [0, 0], sizes = [2, 128], strides = [1, 1]} : vector<16x128xf32> to vector<2x128xf32>
    %20 = arith.addf %19, %18 : vector<2x128xf32>
    %21 = vector.extract_strided_slice %20 {offsets = [0, 0], sizes = [2, 96], strides = [1, 1]} : vector<2x128xf32> to vector<2x96xf32>
    %22 = arith.negf %21 : vector<2x96xf32>
    %23 = math.exp %22 : vector<2x96xf32>
    %cst_13 = arith.constant 1.000000e+00 : f32
    %24 = vector.broadcast %cst_13 : f32 to vector<2x96xf32>
    %25 = arith.addf %24, %23 : vector<2x96xf32>
    %26 = arith.divf %24, %25 : vector<2x96xf32>
    %27 = vector.extract_strided_slice %20 {offsets = [0, 96], sizes = [2, 32], strides = [1, 1]} : vector<2x128xf32> to vector<2x32xf32>
    %28 = math.tanh %27 : vector<2x32xf32>
    %29 = vector.extract_strided_slice %26 {offsets = [0, 0], sizes = [2, 32], strides = [1, 1]} : vector<2x96xf32> to vector<2x32xf32>
    %30 = vector.extract_strided_slice %26 {offsets = [0, 32], sizes = [2, 32], strides = [1, 1]} : vector<2x96xf32> to vector<2x32xf32>
    %31 = vector.extract_strided_slice %26 {offsets = [0, 64], sizes = [2, 32], strides = [1, 1]} : vector<2x96xf32> to vector<2x32xf32>
    %32 = arith.mulf %30, %16 : vector<2x32xf32>
    %33 = arith.mulf %29, %28 : vector<2x32xf32>
    %34 = arith.addf %32, %33 : vector<2x32xf32>
    %35 = math.tanh %34 : vector<2x32xf32>
    %36 = arith.mulf %31, %35 : vector<2x32xf32>
    %37 = arith.truncf %36 : vector<2x32xf32> to vector<2x32xbf16>
    %cst_14 = arith.constant dense<0.000000e+00> : vector<2x128xf32>
    %38 = tpu.matmul %37, %1, %cst_14 {dimension_numbers = #tpu.dot_dimension_numbers<[1], [0], [0], [1], [0, 0, 1, 1], [], []>} : vector<2x32xbf16>, vector<32x128xbf16>, vector<2x128xf32> -> vector<2x128xf32>
    %39 = vector.extract_strided_slice %14 {offsets = [2, 0], sizes = [2, 128], strides = [1, 1]} : vector<16x128xf32> to vector<2x128xf32>
    %40 = arith.addf %39, %38 : vector<2x128xf32>
    %41 = vector.extract_strided_slice %40 {offsets = [0, 0], sizes = [2, 96], strides = [1, 1]} : vector<2x128xf32> to vector<2x96xf32>
    %42 = arith.negf %41 : vector<2x96xf32>
    %43 = math.exp %42 : vector<2x96xf32>
    %cst_15 = arith.constant 1.000000e+00 : f32
    %44 = vector.broadcast %cst_15 : f32 to vector<2x96xf32>
    %45 = arith.addf %44, %43 : vector<2x96xf32>
    %46 = arith.divf %44, %45 : vector<2x96xf32>
    %47 = vector.extract_strided_slice %40 {offsets = [0, 96], sizes = [2, 32], strides = [1, 1]} : vector<2x128xf32> to vector<2x32xf32>
    %48 = math.tanh %47 : vector<2x32xf32>
    %49 = vector.extract_strided_slice %46 {offsets = [0, 0], sizes = [2, 32], strides = [1, 1]} : vector<2x96xf32> to vector<2x32xf32>
    %50 = vector.extract_strided_slice %46 {offsets = [0, 32], sizes = [2, 32], strides = [1, 1]} : vector<2x96xf32> to vector<2x32xf32>
    %51 = vector.extract_strided_slice %46 {offsets = [0, 64], sizes = [2, 32], strides = [1, 1]} : vector<2x96xf32> to vector<2x32xf32>
    %52 = arith.mulf %50, %34 : vector<2x32xf32>
    %53 = arith.mulf %49, %48 : vector<2x32xf32>
    %54 = arith.addf %52, %53 : vector<2x32xf32>
    %55 = math.tanh %54 : vector<2x32xf32>
    %56 = arith.mulf %51, %55 : vector<2x32xf32>
    %57 = arith.truncf %56 : vector<2x32xf32> to vector<2x32xbf16>
    %cst_16 = arith.constant dense<0.000000e+00> : vector<2x128xf32>
    %58 = tpu.matmul %57, %1, %cst_16 {dimension_numbers = #tpu.dot_dimension_numbers<[1], [0], [0], [1], [0, 0, 1, 1], [], []>} : vector<2x32xbf16>, vector<32x128xbf16>, vector<2x128xf32> -> vector<2x128xf32>
    %59 = vector.extract_strided_slice %14 {offsets = [4, 0], sizes = [2, 128], strides = [1, 1]} : vector<16x128xf32> to vector<2x128xf32>
    %60 = arith.addf %59, %58 : vector<2x128xf32>
    %61 = vector.extract_strided_slice %60 {offsets = [0, 0], sizes = [2, 96], strides = [1, 1]} : vector<2x128xf32> to vector<2x96xf32>
    %62 = arith.negf %61 : vector<2x96xf32>
    %63 = math.exp %62 : vector<2x96xf32>
    %cst_17 = arith.constant 1.000000e+00 : f32
    %64 = vector.broadcast %cst_17 : f32 to vector<2x96xf32>
    %65 = arith.addf %64, %63 : vector<2x96xf32>
    %66 = arith.divf %64, %65 : vector<2x96xf32>
    %67 = vector.extract_strided_slice %60 {offsets = [0, 96], sizes = [2, 32], strides = [1, 1]} : vector<2x128xf32> to vector<2x32xf32>
    %68 = math.tanh %67 : vector<2x32xf32>
    %69 = vector.extract_strided_slice %66 {offsets = [0, 0], sizes = [2, 32], strides = [1, 1]} : vector<2x96xf32> to vector<2x32xf32>
    %70 = vector.extract_strided_slice %66 {offsets = [0, 32], sizes = [2, 32], strides = [1, 1]} : vector<2x96xf32> to vector<2x32xf32>
    %71 = vector.extract_strided_slice %66 {offsets = [0, 64], sizes = [2, 32], strides = [1, 1]} : vector<2x96xf32> to vector<2x32xf32>
    %72 = arith.mulf %70, %54 : vector<2x32xf32>
    %73 = arith.mulf %69, %68 : vector<2x32xf32>
    %74 = arith.addf %72, %73 : vector<2x32xf32>
    %75 = math.tanh %74 : vector<2x32xf32>
    %76 = arith.mulf %71, %75 : vector<2x32xf32>
    %77 = arith.truncf %76 : vector<2x32xf32> to vector<2x32xbf16>
    %cst_18 = arith.constant dense<0.000000e+00> : vector<2x128xf32>
    %78 = tpu.matmul %77, %1, %cst_18 {dimension_numbers = #tpu.dot_dimension_numbers<[1], [0], [0], [1], [0, 0, 1, 1], [], []>} : vector<2x32xbf16>, vector<32x128xbf16>, vector<2x128xf32> -> vector<2x128xf32>
    %79 = vector.extract_strided_slice %14 {offsets = [6, 0], sizes = [2, 128], strides = [1, 1]} : vector<16x128xf32> to vector<2x128xf32>
    %80 = arith.addf %79, %78 : vector<2x128xf32>
    %81 = vector.extract_strided_slice %80 {offsets = [0, 0], sizes = [2, 96], strides = [1, 1]} : vector<2x128xf32> to vector<2x96xf32>
    %82 = arith.negf %81 : vector<2x96xf32>
    %83 = math.exp %82 : vector<2x96xf32>
    %cst_19 = arith.constant 1.000000e+00 : f32
    %84 = vector.broadcast %cst_19 : f32 to vector<2x96xf32>
    %85 = arith.addf %84, %83 : vector<2x96xf32>
    %86 = arith.divf %84, %85 : vector<2x96xf32>
    %87 = vector.extract_strided_slice %80 {offsets = [0, 96], sizes = [2, 32], strides = [1, 1]} : vector<2x128xf32> to vector<2x32xf32>
    %88 = math.tanh %87 : vector<2x32xf32>
    %89 = vector.extract_strided_slice %86 {offsets = [0, 0], sizes = [2, 32], strides = [1, 1]} : vector<2x96xf32> to vector<2x32xf32>
    %90 = vector.extract_strided_slice %86 {offsets = [0, 32], sizes = [2, 32], strides = [1, 1]} : vector<2x96xf32> to vector<2x32xf32>
    %91 = vector.extract_strided_slice %86 {offsets = [0, 64], sizes = [2, 32], strides = [1, 1]} : vector<2x96xf32> to vector<2x32xf32>
    %92 = arith.mulf %90, %74 : vector<2x32xf32>
    %93 = arith.mulf %89, %88 : vector<2x32xf32>
    %94 = arith.addf %92, %93 : vector<2x32xf32>
    %95 = math.tanh %94 : vector<2x32xf32>
    %96 = arith.mulf %91, %95 : vector<2x32xf32>
    %97 = arith.truncf %96 : vector<2x32xf32> to vector<2x32xbf16>
    %cst_20 = arith.constant dense<0.000000e+00> : vector<2x128xf32>
    %98 = tpu.matmul %97, %1, %cst_20 {dimension_numbers = #tpu.dot_dimension_numbers<[1], [0], [0], [1], [0, 0, 1, 1], [], []>} : vector<2x32xbf16>, vector<32x128xbf16>, vector<2x128xf32> -> vector<2x128xf32>
    %99 = vector.extract_strided_slice %14 {offsets = [8, 0], sizes = [2, 128], strides = [1, 1]} : vector<16x128xf32> to vector<2x128xf32>
    %100 = arith.addf %99, %98 : vector<2x128xf32>
    %101 = vector.extract_strided_slice %100 {offsets = [0, 0], sizes = [2, 96], strides = [1, 1]} : vector<2x128xf32> to vector<2x96xf32>
    %102 = arith.negf %101 : vector<2x96xf32>
    %103 = math.exp %102 : vector<2x96xf32>
    %cst_21 = arith.constant 1.000000e+00 : f32
    %104 = vector.broadcast %cst_21 : f32 to vector<2x96xf32>
    %105 = arith.addf %104, %103 : vector<2x96xf32>
    %106 = arith.divf %104, %105 : vector<2x96xf32>
    %107 = vector.extract_strided_slice %100 {offsets = [0, 96], sizes = [2, 32], strides = [1, 1]} : vector<2x128xf32> to vector<2x32xf32>
    %108 = math.tanh %107 : vector<2x32xf32>
    %109 = vector.extract_strided_slice %106 {offsets = [0, 0], sizes = [2, 32], strides = [1, 1]} : vector<2x96xf32> to vector<2x32xf32>
    %110 = vector.extract_strided_slice %106 {offsets = [0, 32], sizes = [2, 32], strides = [1, 1]} : vector<2x96xf32> to vector<2x32xf32>
    %111 = vector.extract_strided_slice %106 {offsets = [0, 64], sizes = [2, 32], strides = [1, 1]} : vector<2x96xf32> to vector<2x32xf32>
    %112 = arith.mulf %110, %94 : vector<2x32xf32>
    %113 = arith.mulf %109, %108 : vector<2x32xf32>
    %114 = arith.addf %112, %113 : vector<2x32xf32>
    %115 = math.tanh %114 : vector<2x32xf32>
    %116 = arith.mulf %111, %115 : vector<2x32xf32>
    %117 = arith.truncf %116 : vector<2x32xf32> to vector<2x32xbf16>
    %cst_22 = arith.constant dense<0.000000e+00> : vector<2x128xf32>
    %118 = tpu.matmul %117, %1, %cst_22 {dimension_numbers = #tpu.dot_dimension_numbers<[1], [0], [0], [1], [0, 0, 1, 1], [], []>} : vector<2x32xbf16>, vector<32x128xbf16>, vector<2x128xf32> -> vector<2x128xf32>
    %119 = vector.extract_strided_slice %14 {offsets = [10, 0], sizes = [2, 128], strides = [1, 1]} : vector<16x128xf32> to vector<2x128xf32>
    %120 = arith.addf %119, %118 : vector<2x128xf32>
    %121 = vector.extract_strided_slice %120 {offsets = [0, 0], sizes = [2, 96], strides = [1, 1]} : vector<2x128xf32> to vector<2x96xf32>
    %122 = arith.negf %121 : vector<2x96xf32>
    %123 = math.exp %122 : vector<2x96xf32>
    %cst_23 = arith.constant 1.000000e+00 : f32
    %124 = vector.broadcast %cst_23 : f32 to vector<2x96xf32>
    %125 = arith.addf %124, %123 : vector<2x96xf32>
    %126 = arith.divf %124, %125 : vector<2x96xf32>
    %127 = vector.extract_strided_slice %120 {offsets = [0, 96], sizes = [2, 32], strides = [1, 1]} : vector<2x128xf32> to vector<2x32xf32>
    %128 = math.tanh %127 : vector<2x32xf32>
    %129 = vector.extract_strided_slice %126 {offsets = [0, 0], sizes = [2, 32], strides = [1, 1]} : vector<2x96xf32> to vector<2x32xf32>
    %130 = vector.extract_strided_slice %126 {offsets = [0, 32], sizes = [2, 32], strides = [1, 1]} : vector<2x96xf32> to vector<2x32xf32>
    %131 = vector.extract_strided_slice %126 {offsets = [0, 64], sizes = [2, 32], strides = [1, 1]} : vector<2x96xf32> to vector<2x32xf32>
    %132 = arith.mulf %130, %114 : vector<2x32xf32>
    %133 = arith.mulf %129, %128 : vector<2x32xf32>
    %134 = arith.addf %132, %133 : vector<2x32xf32>
    %135 = math.tanh %134 : vector<2x32xf32>
    %136 = arith.mulf %131, %135 : vector<2x32xf32>
    %137 = arith.truncf %136 : vector<2x32xf32> to vector<2x32xbf16>
    %cst_24 = arith.constant dense<0.000000e+00> : vector<2x128xf32>
    %138 = tpu.matmul %137, %1, %cst_24 {dimension_numbers = #tpu.dot_dimension_numbers<[1], [0], [0], [1], [0, 0, 1, 1], [], []>} : vector<2x32xbf16>, vector<32x128xbf16>, vector<2x128xf32> -> vector<2x128xf32>
    %139 = vector.extract_strided_slice %14 {offsets = [12, 0], sizes = [2, 128], strides = [1, 1]} : vector<16x128xf32> to vector<2x128xf32>
    %140 = arith.addf %139, %138 : vector<2x128xf32>
    %141 = vector.extract_strided_slice %140 {offsets = [0, 0], sizes = [2, 96], strides = [1, 1]} : vector<2x128xf32> to vector<2x96xf32>
    %142 = arith.negf %141 : vector<2x96xf32>
    %143 = math.exp %142 : vector<2x96xf32>
    %cst_25 = arith.constant 1.000000e+00 : f32
    %144 = vector.broadcast %cst_25 : f32 to vector<2x96xf32>
    %145 = arith.addf %144, %143 : vector<2x96xf32>
    %146 = arith.divf %144, %145 : vector<2x96xf32>
    %147 = vector.extract_strided_slice %140 {offsets = [0, 96], sizes = [2, 32], strides = [1, 1]} : vector<2x128xf32> to vector<2x32xf32>
    %148 = math.tanh %147 : vector<2x32xf32>
    %149 = vector.extract_strided_slice %146 {offsets = [0, 0], sizes = [2, 32], strides = [1, 1]} : vector<2x96xf32> to vector<2x32xf32>
    %150 = vector.extract_strided_slice %146 {offsets = [0, 32], sizes = [2, 32], strides = [1, 1]} : vector<2x96xf32> to vector<2x32xf32>
    %151 = vector.extract_strided_slice %146 {offsets = [0, 64], sizes = [2, 32], strides = [1, 1]} : vector<2x96xf32> to vector<2x32xf32>
    %152 = arith.mulf %150, %134 : vector<2x32xf32>
    %153 = arith.mulf %149, %148 : vector<2x32xf32>
    %154 = arith.addf %152, %153 : vector<2x32xf32>
    %155 = math.tanh %154 : vector<2x32xf32>
    %156 = arith.mulf %151, %155 : vector<2x32xf32>
    %157 = arith.truncf %156 : vector<2x32xf32> to vector<2x32xbf16>
    %cst_26 = arith.constant dense<0.000000e+00> : vector<2x128xf32>
    %158 = tpu.matmul %157, %1, %cst_26 {dimension_numbers = #tpu.dot_dimension_numbers<[1], [0], [0], [1], [0, 0, 1, 1], [], []>} : vector<2x32xbf16>, vector<32x128xbf16>, vector<2x128xf32> -> vector<2x128xf32>
    %159 = vector.extract_strided_slice %14 {offsets = [14, 0], sizes = [2, 128], strides = [1, 1]} : vector<16x128xf32> to vector<2x128xf32>
    %160 = arith.addf %159, %158 : vector<2x128xf32>
    %161 = vector.extract_strided_slice %160 {offsets = [0, 0], sizes = [2, 96], strides = [1, 1]} : vector<2x128xf32> to vector<2x96xf32>
    %162 = arith.negf %161 : vector<2x96xf32>
    %163 = math.exp %162 : vector<2x96xf32>
    %cst_27 = arith.constant 1.000000e+00 : f32
    %164 = vector.broadcast %cst_27 : f32 to vector<2x96xf32>
    %165 = arith.addf %164, %163 : vector<2x96xf32>
    %166 = arith.divf %164, %165 : vector<2x96xf32>
    %167 = vector.extract_strided_slice %160 {offsets = [0, 96], sizes = [2, 32], strides = [1, 1]} : vector<2x128xf32> to vector<2x32xf32>
    %168 = math.tanh %167 : vector<2x32xf32>
    %169 = vector.extract_strided_slice %166 {offsets = [0, 0], sizes = [2, 32], strides = [1, 1]} : vector<2x96xf32> to vector<2x32xf32>
    %170 = vector.extract_strided_slice %166 {offsets = [0, 32], sizes = [2, 32], strides = [1, 1]} : vector<2x96xf32> to vector<2x32xf32>
    %171 = vector.extract_strided_slice %166 {offsets = [0, 64], sizes = [2, 32], strides = [1, 1]} : vector<2x96xf32> to vector<2x32xf32>
    %172 = arith.mulf %170, %154 : vector<2x32xf32>
    %173 = arith.mulf %169, %168 : vector<2x32xf32>
    %174 = arith.addf %172, %173 : vector<2x32xf32>
    %175 = math.tanh %174 : vector<2x32xf32>
    %176 = arith.mulf %171, %175 : vector<2x32xf32>
    %177 = tpu.concatenate %36, %56, %76, %96, %116, %136, %156, %176 in 0 : vector<2x32xf32>, vector<2x32xf32>, vector<2x32xf32>, vector<2x32xf32>, vector<2x32xf32>, vector<2x32xf32>, vector<2x32xf32>, vector<2x32xf32> -> vector<16x32xf32>
    %178 = arith.truncf %177 : vector<16x32xf32> to vector<16x32xbf16>
    %cst_28 = arith.constant dense<0.000000e+00> : vector<16x128xf32>
    %179 = tpu.matmul %178, %2, %cst_28 {dimension_numbers = #tpu.dot_dimension_numbers<[1], [0], [0], [1], [0, 0, 1, 1], [], []>} : vector<16x32xbf16>, vector<32x128xbf16>, vector<16x128xf32> -> vector<16x128xf32>
    %180 = vector.broadcast %7 : vector<1x128xf32> to vector<16x128xf32>
    %181 = arith.addf %179, %180 : vector<16x128xf32>
    %cst_29 = arith.constant 0.000000e+00 : f32
    %182 = vector.broadcast %cst_29 : f32 to vector<2x32xf32>
    %cst_30 = arith.constant 0.000000e+00 : f32
    %183 = vector.broadcast %cst_30 : f32 to vector<2x32xf32>
    %184 = arith.truncf %182 : vector<2x32xf32> to vector<2x32xbf16>
    %cst_31 = arith.constant dense<0.000000e+00> : vector<2x128xf32>
    %185 = tpu.matmul %184, %3, %cst_31 {dimension_numbers = #tpu.dot_dimension_numbers<[1], [0], [0], [1], [0, 0, 1, 1], [], []>} : vector<2x32xbf16>, vector<32x128xbf16>, vector<2x128xf32> -> vector<2x128xf32>
    %186 = vector.extract_strided_slice %181 {offsets = [0, 0], sizes = [2, 128], strides = [1, 1]} : vector<16x128xf32> to vector<2x128xf32>
    %187 = arith.addf %186, %185 : vector<2x128xf32>
    %188 = vector.extract_strided_slice %187 {offsets = [0, 0], sizes = [2, 96], strides = [1, 1]} : vector<2x128xf32> to vector<2x96xf32>
    %189 = arith.negf %188 : vector<2x96xf32>
    %190 = math.exp %189 : vector<2x96xf32>
    %cst_32 = arith.constant 1.000000e+00 : f32
    %191 = vector.broadcast %cst_32 : f32 to vector<2x96xf32>
    %192 = arith.addf %191, %190 : vector<2x96xf32>
    %193 = arith.divf %191, %192 : vector<2x96xf32>
    %194 = vector.extract_strided_slice %187 {offsets = [0, 96], sizes = [2, 32], strides = [1, 1]} : vector<2x128xf32> to vector<2x32xf32>
    %195 = math.tanh %194 : vector<2x32xf32>
    %196 = vector.extract_strided_slice %193 {offsets = [0, 0], sizes = [2, 32], strides = [1, 1]} : vector<2x96xf32> to vector<2x32xf32>
    %197 = vector.extract_strided_slice %193 {offsets = [0, 32], sizes = [2, 32], strides = [1, 1]} : vector<2x96xf32> to vector<2x32xf32>
    %198 = vector.extract_strided_slice %193 {offsets = [0, 64], sizes = [2, 32], strides = [1, 1]} : vector<2x96xf32> to vector<2x32xf32>
    %199 = arith.mulf %197, %183 : vector<2x32xf32>
    %200 = arith.mulf %196, %195 : vector<2x32xf32>
    %201 = arith.addf %199, %200 : vector<2x32xf32>
    %202 = math.tanh %201 : vector<2x32xf32>
    %203 = arith.mulf %198, %202 : vector<2x32xf32>
    %204 = arith.truncf %203 : vector<2x32xf32> to vector<2x32xbf16>
    %cst_33 = arith.constant dense<0.000000e+00> : vector<2x128xf32>
    %205 = tpu.matmul %204, %3, %cst_33 {dimension_numbers = #tpu.dot_dimension_numbers<[1], [0], [0], [1], [0, 0, 1, 1], [], []>} : vector<2x32xbf16>, vector<32x128xbf16>, vector<2x128xf32> -> vector<2x128xf32>
    %206 = vector.extract_strided_slice %181 {offsets = [2, 0], sizes = [2, 128], strides = [1, 1]} : vector<16x128xf32> to vector<2x128xf32>
    %207 = arith.addf %206, %205 : vector<2x128xf32>
    %208 = vector.extract_strided_slice %207 {offsets = [0, 0], sizes = [2, 96], strides = [1, 1]} : vector<2x128xf32> to vector<2x96xf32>
    %209 = arith.negf %208 : vector<2x96xf32>
    %210 = math.exp %209 : vector<2x96xf32>
    %cst_34 = arith.constant 1.000000e+00 : f32
    %211 = vector.broadcast %cst_34 : f32 to vector<2x96xf32>
    %212 = arith.addf %211, %210 : vector<2x96xf32>
    %213 = arith.divf %211, %212 : vector<2x96xf32>
    %214 = vector.extract_strided_slice %207 {offsets = [0, 96], sizes = [2, 32], strides = [1, 1]} : vector<2x128xf32> to vector<2x32xf32>
    %215 = math.tanh %214 : vector<2x32xf32>
    %216 = vector.extract_strided_slice %213 {offsets = [0, 0], sizes = [2, 32], strides = [1, 1]} : vector<2x96xf32> to vector<2x32xf32>
    %217 = vector.extract_strided_slice %213 {offsets = [0, 32], sizes = [2, 32], strides = [1, 1]} : vector<2x96xf32> to vector<2x32xf32>
    %218 = vector.extract_strided_slice %213 {offsets = [0, 64], sizes = [2, 32], strides = [1, 1]} : vector<2x96xf32> to vector<2x32xf32>
    %219 = arith.mulf %217, %201 : vector<2x32xf32>
    %220 = arith.mulf %216, %215 : vector<2x32xf32>
    %221 = arith.addf %219, %220 : vector<2x32xf32>
    %222 = math.tanh %221 : vector<2x32xf32>
    %223 = arith.mulf %218, %222 : vector<2x32xf32>
    %224 = arith.truncf %223 : vector<2x32xf32> to vector<2x32xbf16>
    %cst_35 = arith.constant dense<0.000000e+00> : vector<2x128xf32>
    %225 = tpu.matmul %224, %3, %cst_35 {dimension_numbers = #tpu.dot_dimension_numbers<[1], [0], [0], [1], [0, 0, 1, 1], [], []>} : vector<2x32xbf16>, vector<32x128xbf16>, vector<2x128xf32> -> vector<2x128xf32>
    %226 = vector.extract_strided_slice %181 {offsets = [4, 0], sizes = [2, 128], strides = [1, 1]} : vector<16x128xf32> to vector<2x128xf32>
    %227 = arith.addf %226, %225 : vector<2x128xf32>
    %228 = vector.extract_strided_slice %227 {offsets = [0, 0], sizes = [2, 96], strides = [1, 1]} : vector<2x128xf32> to vector<2x96xf32>
    %229 = arith.negf %228 : vector<2x96xf32>
    %230 = math.exp %229 : vector<2x96xf32>
    %cst_36 = arith.constant 1.000000e+00 : f32
    %231 = vector.broadcast %cst_36 : f32 to vector<2x96xf32>
    %232 = arith.addf %231, %230 : vector<2x96xf32>
    %233 = arith.divf %231, %232 : vector<2x96xf32>
    %234 = vector.extract_strided_slice %227 {offsets = [0, 96], sizes = [2, 32], strides = [1, 1]} : vector<2x128xf32> to vector<2x32xf32>
    %235 = math.tanh %234 : vector<2x32xf32>
    %236 = vector.extract_strided_slice %233 {offsets = [0, 0], sizes = [2, 32], strides = [1, 1]} : vector<2x96xf32> to vector<2x32xf32>
    %237 = vector.extract_strided_slice %233 {offsets = [0, 32], sizes = [2, 32], strides = [1, 1]} : vector<2x96xf32> to vector<2x32xf32>
    %238 = vector.extract_strided_slice %233 {offsets = [0, 64], sizes = [2, 32], strides = [1, 1]} : vector<2x96xf32> to vector<2x32xf32>
    %239 = arith.mulf %237, %221 : vector<2x32xf32>
    %240 = arith.mulf %236, %235 : vector<2x32xf32>
    %241 = arith.addf %239, %240 : vector<2x32xf32>
    %242 = math.tanh %241 : vector<2x32xf32>
    %243 = arith.mulf %238, %242 : vector<2x32xf32>
    %244 = arith.truncf %243 : vector<2x32xf32> to vector<2x32xbf16>
    %cst_37 = arith.constant dense<0.000000e+00> : vector<2x128xf32>
    %245 = tpu.matmul %244, %3, %cst_37 {dimension_numbers = #tpu.dot_dimension_numbers<[1], [0], [0], [1], [0, 0, 1, 1], [], []>} : vector<2x32xbf16>, vector<32x128xbf16>, vector<2x128xf32> -> vector<2x128xf32>
    %246 = vector.extract_strided_slice %181 {offsets = [6, 0], sizes = [2, 128], strides = [1, 1]} : vector<16x128xf32> to vector<2x128xf32>
    %247 = arith.addf %246, %245 : vector<2x128xf32>
    %248 = vector.extract_strided_slice %247 {offsets = [0, 0], sizes = [2, 96], strides = [1, 1]} : vector<2x128xf32> to vector<2x96xf32>
    %249 = arith.negf %248 : vector<2x96xf32>
    %250 = math.exp %249 : vector<2x96xf32>
    %cst_38 = arith.constant 1.000000e+00 : f32
    %251 = vector.broadcast %cst_38 : f32 to vector<2x96xf32>
    %252 = arith.addf %251, %250 : vector<2x96xf32>
    %253 = arith.divf %251, %252 : vector<2x96xf32>
    %254 = vector.extract_strided_slice %247 {offsets = [0, 96], sizes = [2, 32], strides = [1, 1]} : vector<2x128xf32> to vector<2x32xf32>
    %255 = math.tanh %254 : vector<2x32xf32>
    %256 = vector.extract_strided_slice %253 {offsets = [0, 0], sizes = [2, 32], strides = [1, 1]} : vector<2x96xf32> to vector<2x32xf32>
    %257 = vector.extract_strided_slice %253 {offsets = [0, 32], sizes = [2, 32], strides = [1, 1]} : vector<2x96xf32> to vector<2x32xf32>
    %258 = vector.extract_strided_slice %253 {offsets = [0, 64], sizes = [2, 32], strides = [1, 1]} : vector<2x96xf32> to vector<2x32xf32>
    %259 = arith.mulf %257, %241 : vector<2x32xf32>
    %260 = arith.mulf %256, %255 : vector<2x32xf32>
    %261 = arith.addf %259, %260 : vector<2x32xf32>
    %262 = math.tanh %261 : vector<2x32xf32>
    %263 = arith.mulf %258, %262 : vector<2x32xf32>
    %264 = arith.truncf %263 : vector<2x32xf32> to vector<2x32xbf16>
    %cst_39 = arith.constant dense<0.000000e+00> : vector<2x128xf32>
    %265 = tpu.matmul %264, %3, %cst_39 {dimension_numbers = #tpu.dot_dimension_numbers<[1], [0], [0], [1], [0, 0, 1, 1], [], []>} : vector<2x32xbf16>, vector<32x128xbf16>, vector<2x128xf32> -> vector<2x128xf32>
    %266 = vector.extract_strided_slice %181 {offsets = [8, 0], sizes = [2, 128], strides = [1, 1]} : vector<16x128xf32> to vector<2x128xf32>
    %267 = arith.addf %266, %265 : vector<2x128xf32>
    %268 = vector.extract_strided_slice %267 {offsets = [0, 0], sizes = [2, 96], strides = [1, 1]} : vector<2x128xf32> to vector<2x96xf32>
    %269 = arith.negf %268 : vector<2x96xf32>
    %270 = math.exp %269 : vector<2x96xf32>
    %cst_40 = arith.constant 1.000000e+00 : f32
    %271 = vector.broadcast %cst_40 : f32 to vector<2x96xf32>
    %272 = arith.addf %271, %270 : vector<2x96xf32>
    %273 = arith.divf %271, %272 : vector<2x96xf32>
    %274 = vector.extract_strided_slice %267 {offsets = [0, 96], sizes = [2, 32], strides = [1, 1]} : vector<2x128xf32> to vector<2x32xf32>
    %275 = math.tanh %274 : vector<2x32xf32>
    %276 = vector.extract_strided_slice %273 {offsets = [0, 0], sizes = [2, 32], strides = [1, 1]} : vector<2x96xf32> to vector<2x32xf32>
    %277 = vector.extract_strided_slice %273 {offsets = [0, 32], sizes = [2, 32], strides = [1, 1]} : vector<2x96xf32> to vector<2x32xf32>
    %278 = vector.extract_strided_slice %273 {offsets = [0, 64], sizes = [2, 32], strides = [1, 1]} : vector<2x96xf32> to vector<2x32xf32>
    %279 = arith.mulf %277, %261 : vector<2x32xf32>
    %280 = arith.mulf %276, %275 : vector<2x32xf32>
    %281 = arith.addf %279, %280 : vector<2x32xf32>
    %282 = math.tanh %281 : vector<2x32xf32>
    %283 = arith.mulf %278, %282 : vector<2x32xf32>
    %284 = arith.truncf %283 : vector<2x32xf32> to vector<2x32xbf16>
    %cst_41 = arith.constant dense<0.000000e+00> : vector<2x128xf32>
    %285 = tpu.matmul %284, %3, %cst_41 {dimension_numbers = #tpu.dot_dimension_numbers<[1], [0], [0], [1], [0, 0, 1, 1], [], []>} : vector<2x32xbf16>, vector<32x128xbf16>, vector<2x128xf32> -> vector<2x128xf32>
    %286 = vector.extract_strided_slice %181 {offsets = [10, 0], sizes = [2, 128], strides = [1, 1]} : vector<16x128xf32> to vector<2x128xf32>
    %287 = arith.addf %286, %285 : vector<2x128xf32>
    %288 = vector.extract_strided_slice %287 {offsets = [0, 0], sizes = [2, 96], strides = [1, 1]} : vector<2x128xf32> to vector<2x96xf32>
    %289 = arith.negf %288 : vector<2x96xf32>
    %290 = math.exp %289 : vector<2x96xf32>
    %cst_42 = arith.constant 1.000000e+00 : f32
    %291 = vector.broadcast %cst_42 : f32 to vector<2x96xf32>
    %292 = arith.addf %291, %290 : vector<2x96xf32>
    %293 = arith.divf %291, %292 : vector<2x96xf32>
    %294 = vector.extract_strided_slice %287 {offsets = [0, 96], sizes = [2, 32], strides = [1, 1]} : vector<2x128xf32> to vector<2x32xf32>
    %295 = math.tanh %294 : vector<2x32xf32>
    %296 = vector.extract_strided_slice %293 {offsets = [0, 0], sizes = [2, 32], strides = [1, 1]} : vector<2x96xf32> to vector<2x32xf32>
    %297 = vector.extract_strided_slice %293 {offsets = [0, 32], sizes = [2, 32], strides = [1, 1]} : vector<2x96xf32> to vector<2x32xf32>
    %298 = vector.extract_strided_slice %293 {offsets = [0, 64], sizes = [2, 32], strides = [1, 1]} : vector<2x96xf32> to vector<2x32xf32>
    %299 = arith.mulf %297, %281 : vector<2x32xf32>
    %300 = arith.mulf %296, %295 : vector<2x32xf32>
    %301 = arith.addf %299, %300 : vector<2x32xf32>
    %302 = math.tanh %301 : vector<2x32xf32>
    %303 = arith.mulf %298, %302 : vector<2x32xf32>
    %304 = arith.truncf %303 : vector<2x32xf32> to vector<2x32xbf16>
    %cst_43 = arith.constant dense<0.000000e+00> : vector<2x128xf32>
    %305 = tpu.matmul %304, %3, %cst_43 {dimension_numbers = #tpu.dot_dimension_numbers<[1], [0], [0], [1], [0, 0, 1, 1], [], []>} : vector<2x32xbf16>, vector<32x128xbf16>, vector<2x128xf32> -> vector<2x128xf32>
    %306 = vector.extract_strided_slice %181 {offsets = [12, 0], sizes = [2, 128], strides = [1, 1]} : vector<16x128xf32> to vector<2x128xf32>
    %307 = arith.addf %306, %305 : vector<2x128xf32>
    %308 = vector.extract_strided_slice %307 {offsets = [0, 0], sizes = [2, 96], strides = [1, 1]} : vector<2x128xf32> to vector<2x96xf32>
    %309 = arith.negf %308 : vector<2x96xf32>
    %310 = math.exp %309 : vector<2x96xf32>
    %cst_44 = arith.constant 1.000000e+00 : f32
    %311 = vector.broadcast %cst_44 : f32 to vector<2x96xf32>
    %312 = arith.addf %311, %310 : vector<2x96xf32>
    %313 = arith.divf %311, %312 : vector<2x96xf32>
    %314 = vector.extract_strided_slice %307 {offsets = [0, 96], sizes = [2, 32], strides = [1, 1]} : vector<2x128xf32> to vector<2x32xf32>
    %315 = math.tanh %314 : vector<2x32xf32>
    %316 = vector.extract_strided_slice %313 {offsets = [0, 0], sizes = [2, 32], strides = [1, 1]} : vector<2x96xf32> to vector<2x32xf32>
    %317 = vector.extract_strided_slice %313 {offsets = [0, 32], sizes = [2, 32], strides = [1, 1]} : vector<2x96xf32> to vector<2x32xf32>
    %318 = vector.extract_strided_slice %313 {offsets = [0, 64], sizes = [2, 32], strides = [1, 1]} : vector<2x96xf32> to vector<2x32xf32>
    %319 = arith.mulf %317, %301 : vector<2x32xf32>
    %320 = arith.mulf %316, %315 : vector<2x32xf32>
    %321 = arith.addf %319, %320 : vector<2x32xf32>
    %322 = math.tanh %321 : vector<2x32xf32>
    %323 = arith.mulf %318, %322 : vector<2x32xf32>
    %324 = arith.truncf %323 : vector<2x32xf32> to vector<2x32xbf16>
    %cst_45 = arith.constant dense<0.000000e+00> : vector<2x128xf32>
    %325 = tpu.matmul %324, %3, %cst_45 {dimension_numbers = #tpu.dot_dimension_numbers<[1], [0], [0], [1], [0, 0, 1, 1], [], []>} : vector<2x32xbf16>, vector<32x128xbf16>, vector<2x128xf32> -> vector<2x128xf32>
    %326 = vector.extract_strided_slice %181 {offsets = [14, 0], sizes = [2, 128], strides = [1, 1]} : vector<16x128xf32> to vector<2x128xf32>
    %327 = arith.addf %326, %325 : vector<2x128xf32>
    %328 = vector.extract_strided_slice %327 {offsets = [0, 0], sizes = [2, 96], strides = [1, 1]} : vector<2x128xf32> to vector<2x96xf32>
    %329 = arith.negf %328 : vector<2x96xf32>
    %330 = math.exp %329 : vector<2x96xf32>
    %cst_46 = arith.constant 1.000000e+00 : f32
    %331 = vector.broadcast %cst_46 : f32 to vector<2x96xf32>
    %332 = arith.addf %331, %330 : vector<2x96xf32>
    %333 = arith.divf %331, %332 : vector<2x96xf32>
    %334 = vector.extract_strided_slice %327 {offsets = [0, 96], sizes = [2, 32], strides = [1, 1]} : vector<2x128xf32> to vector<2x32xf32>
    %335 = math.tanh %334 : vector<2x32xf32>
    %336 = vector.extract_strided_slice %333 {offsets = [0, 0], sizes = [2, 32], strides = [1, 1]} : vector<2x96xf32> to vector<2x32xf32>
    %337 = vector.extract_strided_slice %333 {offsets = [0, 32], sizes = [2, 32], strides = [1, 1]} : vector<2x96xf32> to vector<2x32xf32>
    %338 = vector.extract_strided_slice %333 {offsets = [0, 64], sizes = [2, 32], strides = [1, 1]} : vector<2x96xf32> to vector<2x32xf32>
    %339 = arith.mulf %337, %321 : vector<2x32xf32>
    %340 = arith.mulf %336, %335 : vector<2x32xf32>
    %341 = arith.addf %339, %340 : vector<2x32xf32>
    %342 = math.tanh %341 : vector<2x32xf32>
    %343 = arith.mulf %338, %342 : vector<2x32xf32>
    %344 = tpu.iota {dimensions = array<i32: 0>} : vector<2x1xi32>
    %cst_47 = arith.constant 0.000000e+00 : f32
    %345 = vector.broadcast %cst_47 : f32 to vector<2x1xf32>
    %c0_i32 = arith.constant 0 : i32
    %346 = vector.broadcast %c0_i32 : i32 to vector<2x1xi32>
    %347 = arith.cmpi eq, %344, %346 : vector<2x1xi32>
    %c0_48 = arith.constant 0 : index
    %348 = memref.load %arg2[%c0_48] : memref<2xf32, #tpu.memory_space<smem>>
    %349 = vector.broadcast %348 : f32 to vector<2x1xf32>
    %350 = arith.select %347, %349, %345 : vector<2x1xi1>, vector<2x1xf32>
    %c1_i32 = arith.constant 1 : i32
    %351 = vector.broadcast %c1_i32 : i32 to vector<2x1xi32>
    %352 = arith.cmpi eq, %344, %351 : vector<2x1xi32>
    %c1 = arith.constant 1 : index
    %353 = memref.load %arg2[%c1] : memref<2xf32, #tpu.memory_space<smem>>
    %354 = vector.broadcast %353 : f32 to vector<2x1xf32>
    %355 = arith.select %352, %354, %350 : vector<2x1xi1>, vector<2x1xf32>
    %356 = arith.truncf %343 : vector<2x32xf32> to vector<2x32xbf16>
    %cst_49 = arith.constant dense<0.000000e+00> : vector<2x128xf32>
    %357 = tpu.matmul %356, %8, %cst_49 {dimension_numbers = #tpu.dot_dimension_numbers<[1], [0], [0], [1], [0, 0, 1, 1], [], []>} : vector<2x32xbf16>, vector<32x128xbf16>, vector<2x128xf32> -> vector<2x128xf32>
    %358 = vector.broadcast %355 : vector<2x1xf32> to vector<2x128xf32>
    %359 = arith.mulf %357, %358 : vector<2x128xf32>
    %360 = vector.broadcast %10 : vector<1x128xf32> to vector<2x128xf32>
    %361 = arith.addf %359, %360 : vector<2x128xf32>
    %362 = vector.extract_strided_slice %361 {offsets = [0, 0], sizes = [2, 4], strides = [1, 1]} : vector<2x128xf32> to vector<2x4xf32>
    %363 = arith.negf %362 : vector<2x4xf32>
    %364 = math.exp %363 : vector<2x4xf32>
    %cst_50 = arith.constant 1.000000e+00 : f32
    %365 = vector.broadcast %cst_50 : f32 to vector<2x4xf32>
    %366 = arith.addf %365, %364 : vector<2x4xf32>
    %367 = arith.divf %365, %366 : vector<2x4xf32>
    %c0_51 = arith.constant 0 : index
    %c0_52 = arith.constant 0 : index
    %368 = vector.load %arg3[%c0_51, %c0_52] : memref<2x4xf32, #tpu.memory_space<vmem>>, vector<2x4xf32>
    tpu.vector_store %arg3[%c0_51, %c0_52], %367 {strides = array<i32>} : memref<2x4xf32, #tpu.memory_space<vmem>>, vector<2x4xf32>,
    return
  }
}

</mosaic_0001>

<bundles_post_ra>
// kernel: tpu_custom_call.1
= control target key start
LH: loop header
LB: loop body
LE: loop exit
PB: predicated region body
PF: predicated region fallthrough
CT: control target
= control target key end

     0   :  { %8 = vsyncpa [#allocation3], 0  ;;  %s2383_s0 = inlined_call_operand.hbm [shape: bf16[16,16], index: 0, kind: input, shape index: {}]   ;;  %s2384_s1 = inlined_call_operand.hbm [shape: bf16[192,128], index: 1, kind: input, shape index: {}]   ;;  %s2385_s2 = inlined_call_operand.vmem [shape: f32[2], index: 2, kind: input, shape index: {}]   ;;  %s2386_s3 = inlined_call_operand.hbm [shape: f32[2,4], index: 3, kind: output, shape index: {}]  }
   0x1   :  { %9 = vsyncpa [#allocation7], 0 }
   0x2   :  { %10 = vsyncpa [#allocation5], 0 }
   0x3   :  { %11 = vsyncpa [#allocation4], 0  ;;  %s2060_s12 = smov [#allocation2]   ;;  %s1974_s16 = scalar_lea.hbm %s2383_s0, 128 }
   0x4   :  { %s17_s13 = sshll.u32 %s2060_s12, 4  ;;  %p1975_p0 = scmp.ne.s32.totalorder %s2383_s0, %s1974_s16  ;;  %s18_s13 = int_to_ptr.vmem [resolvable:$true] %s17_s13 }
   0x5   :  { %p1978_p1 = scmp.lt.u32.totalorder %s1974_s16, %s2383_s0 }
   0x7   :  { %p1980_p2 = pnand %p1978_p1, %p1975_p0 }
   0x9   :  { %1983 = shalt.err (!%p1980_p2)
}
   0xa   :  { %s1984_s21 = scalar_lea.vmem %s18_s13, 128  ;;  %p1989_p4 = scmp.lt.s32.totalorder %s18_s13, %s18_s13 }
   0xb   :  { %p1985_p3 = scmp.ne.s32.totalorder %s18_s13, %s1984_s21  ;;  %p1990_p5 = scmp.lt.s32.totalorder %s1984_s21, %s1984_s21 }
   0xd   :  { %p1991_p6 = por %p1990_p5, %p1989_p4 }
   0xf   :  { %p1992_p7 = pnand %p1991_p6, %p1985_p3 }
  0x11   :  { %1995 = shalt.err (!%p1992_p7)
}
  0x12   :  { %s2061_s22 = smov 64   ;;  %s2062_s23 = smov 4  }
  0x13   :  { %23 = dma.hbm_to_vmem [thread:$0]  %s2383_s0, 128, %s18_s13, [#allocation3], %s2061_s22, %s2061_s22, %s2062_s23  }
  0x14   :  { %s2063_s26 = smov [#allocation6]   ;;  %s42_s30 = sshll.u32 %s2385_s2, 4  ;;  %s43_s30 = int_to_ptr.vmem [resolvable:$true] %s42_s30 }
  0x15   :  { %s29_s27 = sshll.u32 %s2063_s26, 4  ;;  %s1996_s6 = scalar_lea.hbm %s2384_s1, 1536  ;;  %s30_s27 = int_to_ptr.vmem [resolvable:$true] %s29_s27 }
  0x16   :  { %p1997_p8 = scmp.ne.s32.totalorder %s2384_s1, %s1996_s6  ;;  %p2000_p9 = scmp.lt.u32.totalorder %s1996_s6, %s2384_s1 }
  0x18   :  { %p2002_p10 = pnand %p2000_p9, %p1997_p8 }
  0x1a   :  { %2005 = shalt.err (!%p2002_p10)
}
  0x1b   :  { %s2006_s0 = scalar_lea.vmem %s30_s27, 1536  ;;  %p2011_p12 = scmp.lt.s32.totalorder %s30_s27, %s30_s27 }
  0x1c   :  { %p2007_p11 = scmp.ne.s32.totalorder %s30_s27, %s2006_s0  ;;  %p2012_p13 = scmp.lt.s32.totalorder %s2006_s0, %s2006_s0 }
  0x1e   :  { %p2013_p0 = por %p2012_p13, %p2011_p12 }
  0x20   :  { %p2014_p1 = pnand %p2013_p0, %p2007_p11 }
  0x22   :  { %2017 = shalt.err (!%p2014_p1)
}
  0x23   :  { %35 = dma.hbm_to_vmem [thread:$0]  %s2384_s1, 1536, %s30_s27, [#allocation7], %s2061_s22, %s2061_s22, %s2062_s23  }
  0x24   :  { %s2018_s12 = scalar_lea.vmem %s43_s30, 16  ;;  %p2023_p3 = scmp.lt.s32.totalorder %s43_s30, %s43_s30 }
  0x25   :  { %p2019_p2 = scmp.ne.s32.totalorder %s43_s30, %s2018_s12  ;;  %p2024_p4 = scmp.lt.s32.totalorder %s2018_s12, %s2018_s12 }
  0x27   :  { %p2025_p5 = por %p2024_p4, %p2023_p3 }
  0x29   :  { %p2026_p6 = pnand %p2025_p5, %p2019_p2 }
  0x2b   :  { %2029 = shalt.err (!%p2026_p6)
}
  0x2c   :  { %s2064_s13 = smov [#allocation8]  }
  0x2d   :  { %45 = dma.vmem_to_smem %s43_s30, 16, %s2064_s13, [#allocation5]  }
  0x2e   :  { %2052 = dma.done.wait [#allocation3], 128  }
  0x2f   :  { %2053 = vsyncadd [#allocation3], 4294967168 }
  0x30   :  { %2054 = dma.done.wait [#allocation7], 1536  }
  0x31   :  { %2055 = vsyncadd [#allocation7], 4294965760 }
  0x32   :  { %2056 = dma.done.wait [#allocation5], 16  }
  0x33   :  { %2057 = vsyncadd [#allocation5], 4294967280 }
  0x34   :  { %55 = sfence }
  0x35   :  { %v1832_v0 = vld [vmem:[#allocation6] sm:$0xff]   ;;  %v2065_v1 = vmov 0.0   ;;  %v2123_v2 = vld [vmem:[#allocation6 + $0x8] sm:$0xff]   ;;  %vm2066_vm0 = vmmov 0   ;;  %v1834_v3 = vld [vmem:[#allocation2] sm:$0xff]   ;;  %vm98_vm1 = vcmask 130048   ;;  %v83_v6 = vlaneseq }
  0x36   :  { %1672 = vmatprep.subr.bf16.mxu0 %v2065_v1  ;;  %1678 = vmatprep.subr.bf16.mxu1 %v2065_v1  ;;  %v2128_v4 = vld [vmem:[#allocation6 + $0x10] sm:$0xff]   ;;  %v2067_v5 = vmov 0   ;;  %v71_v8 = vld [vmem:[#allocation6 + $0x38] sm:$0x1]  ;;  %s2068_s1 = smov 32   ;;  %vm155_vm2 = vcmask 261120  }
  0x37   :  { %1673 = vmatpush3.bf16.msra.mxu0 %v1832_v0  ;;  %1674 = vmatprep.mubr.msk.bf16.mxu0 %vm2066_vm0, %v2065_v1  ;;  %v2149_v7 = vshrl.u32 %v83_v6, 7  ;;  %v72_v9 = vunpack.c.l.bf16 %v71_v8  ;;  %vm772_vm3 = vcmask 1041408   ;;  %vm774_vm4 = vcmask 1043456   ;;  %s1473_s14 = sld [smem:[#allocation8]]  ;;  %s1611_s15 = sld [smem:[#allocation8 + $0x1]] }
  0x38   :  { %1679 = vmatpush3.bf16.msra.mxu1 %v2123_v2  ;;  %1682 = vmatprep.mubr.msk.bf16.mxu1 %vm2066_vm0, %v2065_v1  ;;  %vm776_vm5 = vcmask 1045504   ;;  %s2069_s16 = smov [#allocation9]   ;;  %vm1552_vm8 = vcmask 25600  }
  0x39   :  { %1680 = vmatprep.subr.bf16.mxu1 %v2065_v1  ;;  %1686 = vmatprep.subr.bf16.mxu0 %v2065_v1  ;;  %v2152_v10 = vsub.s32 0, %v2149_v7  ;;  %vm1472_vm6 = vcmp.eq.s32.totalorder %v2149_v7, 0  ;;  %vm1476_vm7 = vcmp.eq.s32.totalorder %v2149_v7, 1  ;;  %s1560_s17 = sshll.u32 %s2069_s16, 4  ;;  %s1561_s17 = int_to_ptr.vmem [resolvable:$true] %s1560_s17 }
  0x3a   :  { %1675 = vmatmul.mubr.msk.bf16.vlgmr.msra.gmra.mrb[0].mxu0 %vm98_vm1, %v1834_v3  ;;  %s2030_s18 = scalar_lea.vmem %s1561_s17, 32  ;;  %p2035_p8 = scmp.lt.s32.totalorder %s1561_s17, %s1561_s17 }
  0x3b   :  { %1687 = vmatpush3.bf16.msra.mxu0 %v2123_v2  ;;  %1690 = vmatprep.mubr.msk.bf16.mxu0 %vm2066_vm0, %v2065_v1  ;;  %v86_v11 = vrot.slane %v72_v9, %v2152_v10  ;;  %p2031_p7 = scmp.ne.s32.totalorder %s1561_s17, %s2030_s18  ;;  %p2036_p9 = scmp.lt.s32.totalorder %s2030_s18, %s2030_s18 }
  0x3c   :  { %1681 = vmatpush3.bf16.msra.mxu1 %v2128_v4  ;;  %1688 = vmatprep.subr.bf16.mxu0 %v2065_v1 }
  0x3d   :  { %1694 = vmatprep.subr.bf16.mxu1 %v2065_v1  ;;  %p2037_p10 = por %p2036_p9, %p2035_p8 }
  0x3f   :  { %1683 = vmatmul.mubr.bf16.vlgmr.msra.gmra.mrb[0].mxu1 %v2067_v5  ;;  %1689 = vmatpush3.bf16.msra.mxu0 %v2128_v4  ;;  %p2038_p11 = pnand %p2037_p10, %p2031_p7 }
  0x40   :  { %1695 = vmatpush3.bf16.msra.mxu1 %v2123_v2  ;;  %1698 = vmatprep.mubr.msk.bf16.mxu1 %vm2066_vm0, %v2065_v1 }
  0x41   :  { %1696 = vmatprep.subr.bf16.mxu1 %v2065_v1  ;;  %1702 = vmatprep.subr.bf16.mxu0 %v2065_v1 }
  0x44   :  { %1697 = vmatpush3.bf16.msra.mxu1 %v2128_v4 }
  0x45   :  { %1710 = vmatprep.subr.bf16.mxu1 %v2065_v1 }
 0x10d   :  { %v136_v12 = vpop.f32.mrb[0].mxu0 }
 0x10e   :  { %v1676_v13 = vpop.f32.mrb[1].mxu0  ;;  %v2155_v14 = vadd.f32 %v136_v12, %v86_v11 }
 0x10f   :  { %v139_v15 = vpop.f32.mrb[2].mxu0 }
 0x110   :  { %v2157_v16 = vadd.f32 %v139_v15, %v86_v11  ;;  %v1677_v17 = vpop.f32.mrb[3].mxu0 }
 0x112   :  { %v193_v18 = vpop.f32.mrb[0].mxu1 }
 0x113   :  { %v199_v19 = vadd.f32 %v193_v18, %v2155_v14  ;;  %v1684_v20 = vpop.f32.mrb[1].mxu1 }
 0x114   :  { %v196_v21 = vpop.f32.mrb[2].mxu1 }
 0x115   :  { %1842 = vtanh.f32 %v199_v19  ;;  %v1685_v22 = vpop.f32.mrb[3].mxu1  ;;  %v1576_v24 = vmul.f32 -1.442695, %v199_v19 }
 0x117   :  { %1844 = vpow2.f32 %v1576_v24 }
 0x11f   :  { %v1843_v23 = vpop.eup %1842 }
 0x120   :  { %209 = vrot.lane.b32.xlu0 %v1843_v23, %s2068_s1 }
 0x121   :  { %v1845_v25 = vpop.eup %1844 }
 0x122   :  { %v203_v26 = vadd.f32 1.0, %v1845_v25 }
 0x124   :  { %1846 = vrcp.f32 %v203_v26 }
 0x12e   :  { %v1847_v27 = vpop.eup %1846 }
 0x12f   :  { %v207_v30 = vmul.f32 0.0, %v1847_v27 }
 0x192   :  { %v210_v28 = vpop.permute.xlu0 %209 }
 0x193   :  { %v212_v29 = vmul.f32 %v1847_v27, %v210_v28 }
 0x195   :  { %214 = vrot.lane.b32.xlu0 %v212_v29, %s2068_s1 }
 0x207   :  { %v215_v31 = vpop.permute.xlu0 %214 }
 0x208   :  { %v217_v32 = vadd.f32 %v215_v31, %v207_v30 }
 0x20a   :  { %1848 = vtanh.f32 %v217_v32  ;;  %v283_v51 = vrot.slane %v217_v32, 6 }
 0x214   :  { %v1849_v33 = vpop.eup %1848 }
 0x215   :  { %220 = vrot.lane.b32.xlu1 %v1849_v33, %s2068_s1 }
 0x287   :  { %v221_v34 = vpop.permute.xlu1 %220 }
 0x288   :  { %v2163_v35 = vmul.f32 %v1847_v27, %v221_v34 }
 0x28a   :  { %v224_v36 = vpack.c.bf16 %v2163_v35, %v2163_v35 }
 0x28c   :  { %226 = vrot.lane.b32.xlu1 %v224_v36, %s2061_s22 }
 0x2fe   :  { %v227_v37 = vpop.permute.xlu1 %226 }
 0x2ff   :  { %1691 = vmatmul.mubr.msk.bf16.vlgmr.msra.gmra.mrb[4].mxu0 %vm155_vm2, %v227_v37 }
 0x300   :  { %1703 = vmatpush3.bf16.msra.mxu0 %v2123_v2  ;;  %1706 = vmatprep.mubr.msk.bf16.mxu0 %vm2066_vm0, %v2065_v1 }
 0x301   :  { %1704 = vmatprep.subr.bf16.mxu0 %v2065_v1 }
 0x304   :  { %1705 = vmatpush3.bf16.msra.mxu0 %v2128_v4 }
 0x305   :  { %1718 = vmatprep.subr.bf16.mxu0 %v2065_v1 }
 0x3d2   :  { %v265_v38 = vpop.f32.mrb[4].mxu0 }
 0x3d3   :  { %v272_v39 = vrot.slane %v265_v38, 6  ;;  %v1692_v40 = vpop.f32.mrb[5].mxu0 }
 0x3d4   :  { %v268_v41 = vpop.f32.mrb[6].mxu0 }
 0x3d5   :  { %v274_v42 = vadd.f32 %v272_v39, %v2155_v14  ;;  %v1693_v43 = vpop.f32.mrb[7].mxu0 }
 0x3d7   :  { %1850 = vtanh.f32 %v274_v42  ;;  %v1578_v45 = vmul.f32 -1.442695, %v274_v42 }
 0x3d9   :  { %1852 = vpow2.f32 %v1578_v45 }
 0x3e1   :  { %v1851_v44 = vpop.eup %1850 }
 0x3e2   :  { %287 = vrot.lane.b32.xlu0 %v1851_v44, %s2068_s1 }
 0x3e3   :  { %v1853_v46 = vpop.eup %1852 }
 0x3e4   :  { %v278_v47 = vadd.f32 1.0, %v1853_v46 }
 0x3e6   :  { %1854 = vrcp.f32 %v278_v47 }
 0x3f0   :  { %v1855_v48 = vpop.eup %1854 }
 0x3f1   :  { %v285_v52 = vmul.f32 %v1855_v48, %v283_v51 }
 0x454   :  { %v288_v49 = vpop.permute.xlu0 %287 }
 0x455   :  { %v290_v50 = vmul.f32 %v1855_v48, %v288_v49 }
 0x457   :  { %292 = vrot.lane.b32.xlu1 %v290_v50, %s2068_s1 }
 0x4c9   :  { %v293_v53 = vpop.permute.xlu1 %292 }
 0x4ca   :  { %v295_v54 = vadd.f32 %v293_v53, %v285_v52 }
 0x4cc   :  { %1856 = vtanh.f32 %v295_v54  ;;  %v362_v18 = vrot.slane %v295_v54, 6 }
 0x4d6   :  { %v1857_v55 = vpop.eup %1856 }
 0x4d7   :  { %298 = vrot.lane.b32.xlu0 %v1857_v55, %s2068_s1 }
 0x549   :  { %v299_v56 = vpop.permute.xlu0 %298 }
 0x54a   :  { %v301_v57 = vmul.f32 %v1855_v48, %v299_v56 }
 0x54c   :  { %v302_v58 = vpack.c.bf16 %v301_v57, %v301_v57  ;;  %v773_v25 = vsel %vm772_vm3, %v2163_v35, %v301_v57 }
 0x54e   :  { %v304_v59 = vrot.slane %v302_v58, 1 }
 0x550   :  { %305 = vrot.lane.b32.xlu1 %v304_v59, %s2061_s22 }
 0x5c2   :  { %v306_v60 = vpop.permute.xlu1 %305 }
 0x5c3   :  { %1699 = vmatmul.mubr.msk.bf16.vlgmr.msra.gmra.mrb[4].mxu1 %vm155_vm2, %v306_v60 }
 0x5c4   :  { %1711 = vmatpush3.bf16.msra.mxu1 %v2123_v2  ;;  %1714 = vmatprep.mubr.msk.bf16.mxu1 %vm2066_vm0, %v2065_v1 }
 0x5c5   :  { %1712 = vmatprep.subr.bf16.mxu1 %v2065_v1 }
 0x5c8   :  { %1713 = vmatpush3.bf16.msra.mxu1 %v2128_v4 }
 0x5c9   :  { %1726 = vmatprep.subr.bf16.mxu1 %v2065_v1 }
 0x696   :  { %v344_v61 = vpop.f32.mrb[4].mxu1 }
 0x697   :  { %v351_v62 = vrot.slane %v344_v61, 4  ;;  %v1700_v63 = vpop.f32.mrb[5].mxu1 }
 0x698   :  { %v347_v0 = vpop.f32.mrb[6].mxu1 }
 0x699   :  { %v353_v3 = vadd.f32 %v351_v62, %v2155_v14  ;;  %v1701_v6 = vpop.f32.mrb[7].mxu1 }
 0x69b   :  { %1858 = vtanh.f32 %v353_v3  ;;  %v1580_v9 = vmul.f32 -1.442695, %v353_v3 }
 0x69d   :  { %1860 = vpow2.f32 %v1580_v9 }
 0x6a5   :  { %v1859_v8 = vpop.eup %1858 }
 0x6a6   :  { %366 = vrot.lane.b32.xlu0 %v1859_v8, %s2068_s1 }
 0x6a7   :  { %v1861_v11 = vpop.eup %1860 }
 0x6a8   :  { %v357_v12 = vadd.f32 1.0, %v1861_v11 }
 0x6aa   :  { %1862 = vrcp.f32 %v357_v12 }
 0x6b4   :  { %v1863_v13 = vpop.eup %1862 }
 0x6b5   :  { %v364_v19 = vmul.f32 %v1863_v13, %v362_v18 }
 0x718   :  { %v367_v15 = vpop.permute.xlu0 %366 }
 0x719   :  { %v369_v17 = vmul.f32 %v1863_v13, %v367_v15 }
 0x71b   :  { %371 = vrot.lane.b32.xlu1 %v369_v17, %s2068_s1 }
 0x78d   :  { %v372_v20 = vpop.permute.xlu1 %371 }
 0x78e   :  { %v374_v21 = vadd.f32 %v372_v20, %v364_v19 }
 0x790   :  { %1864 = vtanh.f32 %v374_v21  ;;  %v441_v43 = vrot.slane %v374_v21, 6 }
 0x79a   :  { %v1865_v22 = vpop.eup %1864 }
 0x79b   :  { %377 = vrot.lane.b32.xlu0 %v1865_v22, %s2068_s1 }
 0x80d   :  { %v378_v23 = vpop.permute.xlu0 %377 }
 0x80e   :  { %v380_v24 = vmul.f32 %v1863_v13, %v378_v23 }
 0x810   :  { %v381_v26 = vpack.c.bf16 %v380_v24, %v380_v24  ;;  %v775_v27 = vsel %vm774_vm4, %v773_v25, %v380_v24 }
 0x812   :  { %v383_v28 = vrot.slane %v381_v26, 2 }
 0x814   :  { %384 = vrot.lane.b32.xlu1 %v383_v28, %s2061_s22 }
 0x886   :  { %v385_v29 = vpop.permute.xlu1 %384 }
 0x887   :  { %1707 = vmatmul.mubr.msk.bf16.vlgmr.msra.gmra.mrb[8].mxu0 %vm155_vm2, %v385_v29 }
 0x888   :  { %1719 = vmatpush3.bf16.msra.mxu0 %v2123_v2  ;;  %1722 = vmatprep.mubr.msk.bf16.mxu0 %vm2066_vm0, %v2065_v1 }
 0x889   :  { %1720 = vmatprep.subr.bf16.mxu0 %v2065_v1 }
 0x88c   :  { %1721 = vmatpush3.bf16.msra.mxu0 %v2128_v4 }
 0x88d   :  { %1734 = vmatprep.subr.bf16.mxu0 %v2065_v1 }
 0x95a   :  { %v423_v30 = vpop.f32.mrb[8].mxu0 }
 0x95b   :  { %v430_v31 = vrot.slane %v423_v30, 2  ;;  %v1708_v32 = vpop.f32.mrb[9].mxu0 }
 0x95c   :  { %v426_v33 = vpop.f32.mrb[10].mxu0 }
 0x95d   :  { %v432_v34 = vadd.f32 %v430_v31, %v2155_v14  ;;  %v1709_v35 = vpop.f32.mrb[11].mxu0 }
 0x95f   :  { %1866 = vtanh.f32 %v432_v34  ;;  %v1582_v37 = vmul.f32 -1.442695, %v432_v34 }
 0x961   :  { %1868 = vpow2.f32 %v1582_v37 }
 0x969   :  { %v1867_v36 = vpop.eup %1866 }
 0x96a   :  { %445 = vrot.lane.b32.xlu0 %v1867_v36, %s2068_s1 }
 0x96b   :  { %v1869_v38 = vpop.eup %1868 }
 0x96c   :  { %v436_v39 = vadd.f32 1.0, %v1869_v38 }
 0x96e   :  { %1870 = vrcp.f32 %v436_v39 }
 0x978   :  { %v1871_v40 = vpop.eup %1870 }
 0x979   :  { %v443_v44 = vmul.f32 %v1871_v40, %v441_v43 }
 0x9dc   :  { %v446_v41 = vpop.permute.xlu0 %445 }
 0x9dd   :  { %v448_v42 = vmul.f32 %v1871_v40, %v446_v41 }
 0x9df   :  { %450 = vrot.lane.b32.xlu1 %v448_v42, %s2068_s1 }
 0xa51   :  { %v451_v45 = vpop.permute.xlu1 %450 }
 0xa52   :  { %v453_v46 = vadd.f32 %v451_v45, %v443_v44 }
 0xa54   :  { %1872 = vtanh.f32 %v453_v46  ;;  %v517_v3 = vrot.slane %v453_v46, 6 }
 0xa5e   :  { %v1873_v14 = vpop.eup %1872 }
 0xa5f   :  { %456 = vrot.lane.b32.xlu0 %v1873_v14, %s2068_s1 }
 0xad1   :  { %v457_v47 = vpop.permute.xlu0 %456 }
 0xad2   :  { %v459_v48 = vmul.f32 %v1871_v40, %v457_v47 }
 0xad4   :  { %v460_v49 = vpack.c.bf16 %v459_v48, %v459_v48  ;;  %v2207_v50 = vsel %vm776_vm5, %v775_v27, %v459_v48 }
 0xad6   :  { %v462_v51 = vrot.slane %v460_v49, 3 }
 0xad8   :  { %463 = vrot.lane.b32.xlu1 %v462_v51, %s2061_s22 }
 0xb4a   :  { %v464_v52 = vpop.permute.xlu1 %463 }
 0xb4b   :  { %1715 = vmatmul.mubr.msk.bf16.vlgmr.msra.gmra.mrb[8].mxu1 %vm155_vm2, %v464_v52 }
 0xb4c   :  { %1727 = vmatpush3.bf16.msra.mxu1 %v2123_v2  ;;  %1730 = vmatprep.mubr.msk.bf16.mxu1 %vm2066_vm0, %v2065_v1 }
 0xb4d   :  { %1728 = vmatprep.subr.bf16.mxu1 %v2065_v1 }
 0xb50   :  { %1729 = vmatpush3.bf16.msra.mxu1 %v2128_v4 }
 0xb51   :  { %1742 = vmatprep.subr.bf16.mxu1 %v2065_v1 }
 0xc1e   :  { %v502_v53 = vpop.f32.mrb[8].mxu1 }
 0xc1f   :  { %v508_v54 = vadd.f32 %v502_v53, %v2157_v16  ;;  %v1716_v55 = vpop.f32.mrb[9].mxu1 }
 0xc20   :  { %v505_v56 = vpop.f32.mrb[10].mxu1 }
 0xc21   :  { %1874 = vtanh.f32 %v508_v54  ;;  %v1717_v57 = vpop.f32.mrb[11].mxu1  ;;  %v1584_v59 = vmul.f32 -1.442695, %v508_v54 }
 0xc23   :  { %1876 = vpow2.f32 %v1584_v59 }
 0xc2b   :  { %v1875_v58 = vpop.eup %1874 }
 0xc2c   :  { %521 = vrot.lane.b32.xlu0 %v1875_v58, %s2068_s1 }
 0xc2d   :  { %v1877_v60 = vpop.eup %1876 }
 0xc2e   :  { %v512_v61 = vadd.f32 1.0, %v1877_v60 }
 0xc30   :  { %1878 = vrcp.f32 %v512_v61 }
 0xc3a   :  { %v1879_v62 = vpop.eup %1878 }
 0xc3b   :  { %v519_v6 = vmul.f32 %v1879_v62, %v517_v3 }
 0xc9e   :  { %v522_v63 = vpop.permute.xlu0 %521 }
 0xc9f   :  { %v524_v0 = vmul.f32 %v1879_v62, %v522_v63 }
 0xca1   :  { %526 = vrot.lane.b32.xlu1 %v524_v0, %s2068_s1 }
 0xd13   :  { %v527_v8 = vpop.permute.xlu1 %526 }
 0xd14   :  { %v529_v9 = vadd.f32 %v527_v8, %v519_v6 }
 0xd16   :  { %1880 = vtanh.f32 %v529_v9  ;;  %v595_v29 = vrot.slane %v529_v9, 6 }
 0xd20   :  { %v1881_v11 = vpop.eup %1880 }
 0xd21   :  { %532 = vrot.lane.b32.xlu0 %v1881_v11, %s2068_s1 }
 0xd93   :  { %v533_v12 = vpop.permute.xlu0 %532 }
 0xd94   :  { %v2221_v13 = vmul.f32 %v1879_v62, %v533_v12 }
 0xd96   :  { %v536_v15 = vpack.c.bf16 %v2221_v13, %v2221_v13 }
 0xd98   :  { %538 = vrot.lane.b32.xlu1 %v536_v15, %s2061_s22 }
 0xe0a   :  { %v539_v17 = vpop.permute.xlu1 %538 }
 0xe0b   :  { %1723 = vmatmul.mubr.msk.bf16.vlgmr.msra.gmra.mrb[12].mxu0 %vm155_vm2, %v539_v17 }
 0xe0c   :  { %1735 = vmatpush3.bf16.msra.mxu0 %v2123_v2  ;;  %1738 = vmatprep.mubr.msk.bf16.mxu0 %vm2066_vm0, %v2065_v1 }
 0xe0d   :  { %1736 = vmatprep.subr.bf16.mxu0 %v2065_v1 }
 0xe10   :  { %1737 = vmatpush3.bf16.msra.mxu0 %v2128_v4 }
 0xe11   :  { %1750 = vmatprep.subr.bf16.mxu0 %v2065_v1 }
 0xede   :  { %v577_v18 = vpop.f32.mrb[12].mxu0 }
 0xedf   :  { %v584_v19 = vrot.slane %v577_v18, 6  ;;  %v1724_v20 = vpop.f32.mrb[13].mxu0 }
 0xee0   :  { %v580_v21 = vpop.f32.mrb[14].mxu0 }
 0xee1   :  { %v586_v22 = vadd.f32 %v584_v19, %v2157_v16  ;;  %v1725_v23 = vpop.f32.mrb[15].mxu0 }
 0xee3   :  { %1882 = vtanh.f32 %v586_v22  ;;  %v1586_v2 = vmul.f32 -1.442695, %v586_v22 }
 0xee5   :  { %1884 = vpow2.f32 %v1586_v2  ;;  %v2255_v2 = vld [vmem:[#allocation6 + $0x28] sm:$0xff]  }
 0xeed   :  { %v1883_v24 = vpop.eup %1882 }
 0xeee   :  { %599 = vrot.lane.b32.xlu0 %v1883_v24, %s2068_s1 }
 0xeef   :  { %v1885_v25 = vpop.eup %1884 }
 0xef0   :  { %v590_v26 = vadd.f32 1.0, %v1885_v25  ;;  %v1838_v25 = vld [vmem:[#allocation6 + $0x20] sm:$0xff]  }
 0xef2   :  { %1886 = vrcp.f32 %v590_v26  ;;  %v2258_v26 = vld [vmem:[#allocation6 + $0x30] sm:$0xff]  }
 0xefc   :  { %v1887_v27 = vpop.eup %1886 }
 0xefd   :  { %v597_v30 = vmul.f32 %v1887_v27, %v595_v29 }
 0xf60   :  { %v600_v4 = vpop.permute.xlu0 %599 }
 0xf61   :  { %v602_v28 = vmul.f32 %v1887_v27, %v600_v4 }
 0xf63   :  { %604 = vrot.lane.b32.xlu1 %v602_v28, %s2068_s1 }
 0xfd5   :  { %v605_v31 = vpop.permute.xlu1 %604 }
 0xfd6   :  { %v607_v32 = vadd.f32 %v605_v31, %v597_v30 }
 0xfd8   :  { %1888 = vtanh.f32 %v607_v32  ;;  %v674_v52 = vrot.slane %v607_v32, 6 }
 0xfe2   :  { %v1889_v33 = vpop.eup %1888 }
 0xfe3   :  { %610 = vrot.lane.b32.xlu0 %v1889_v33, %s2068_s1 }
0x1055   :  { %v611_v34 = vpop.permute.xlu0 %610 }
0x1056   :  { %v613_v35 = vmul.f32 %v1887_v27, %v611_v34 }
0x1058   :  { %v614_v36 = vpack.c.bf16 %v613_v35, %v613_v35  ;;  %v778_v59 = vsel %vm772_vm3, %v2221_v13, %v613_v35 }
0x105a   :  { %v616_v37 = vrot.slane %v614_v36, 1 }
0x105c   :  { %617 = vrot.lane.b32.xlu1 %v616_v37, %s2061_s22 }
0x10ce   :  { %v618_v38 = vpop.permute.xlu1 %617 }
0x10cf   :  { %1731 = vmatmul.mubr.msk.bf16.vlgmr.msra.gmra.mrb[12].mxu1 %vm155_vm2, %v618_v38 }
0x10d0   :  { %1746 = vmatprep.mubr.msk.bf16.mxu1 %vm2066_vm0, %v2065_v1 }
0x11a2   :  { %v656_v39 = vpop.f32.mrb[12].mxu1 }
0x11a3   :  { %v663_v40 = vrot.slane %v656_v39, 4  ;;  %v1732_v41 = vpop.f32.mrb[13].mxu1 }
0x11a4   :  { %v659_v42 = vpop.f32.mrb[14].mxu1 }
0x11a5   :  { %v665_v43 = vadd.f32 %v663_v40, %v2157_v16  ;;  %v1733_v44 = vpop.f32.mrb[15].mxu1 }
0x11a7   :  { %1890 = vtanh.f32 %v665_v43  ;;  %v1588_v46 = vmul.f32 -1.442695, %v665_v43 }
0x11a9   :  { %1892 = vpow2.f32 %v1588_v46 }
0x11b1   :  { %v1891_v45 = vpop.eup %1890 }
0x11b2   :  { %678 = vrot.lane.b32.xlu0 %v1891_v45, %s2068_s1 }
0x11b3   :  { %v1893_v14 = vpop.eup %1892 }
0x11b4   :  { %v669_v47 = vadd.f32 1.0, %v1893_v14 }
0x11b6   :  { %1894 = vrcp.f32 %v669_v47 }
0x11c0   :  { %v1895_v48 = vpop.eup %1894 }
0x11c1   :  { %v676_v53 = vmul.f32 %v1895_v48, %v674_v52 }
0x1224   :  { %v679_v49 = vpop.permute.xlu0 %678 }
0x1225   :  { %v681_v51 = vmul.f32 %v1895_v48, %v679_v49 }
0x1227   :  { %683 = vrot.lane.b32.xlu1 %v681_v51, %s2068_s1 }
0x1299   :  { %v684_v54 = vpop.permute.xlu1 %683 }
0x129a   :  { %v686_v55 = vadd.f32 %v684_v54, %v676_v53 }
0x129c   :  { %1896 = vtanh.f32 %v686_v55  ;;  %v753_v21 = vrot.slane %v686_v55, 6 }
0x12a6   :  { %v1897_v56 = vpop.eup %1896 }
0x12a7   :  { %689 = vrot.lane.b32.xlu0 %v1897_v56, %s2068_s1 }
0x1319   :  { %v690_v57 = vpop.permute.xlu0 %689 }
0x131a   :  { %v692_v58 = vmul.f32 %v1895_v48, %v690_v57 }
0x131c   :  { %v693_v60 = vpack.c.bf16 %v692_v58, %v692_v58  ;;  %v779_v61 = vsel %vm774_vm4, %v778_v59, %v692_v58 }
0x131e   :  { %v695_v62 = vrot.slane %v693_v60, 2 }
0x1320   :  { %696 = vrot.lane.b32.xlu1 %v695_v62, %s2061_s22 }
0x1392   :  { %v697_v63 = vpop.permute.xlu1 %696 }
0x1393   :  { %1739 = vmatmul.mubr.msk.bf16.vlgmr.msra.gmra.mrb[16].mxu0 %vm155_vm2, %v697_v63 }
0x1394   :  { %1754 = vmatprep.mubr.msk.bf16.mxu0 %vm2066_vm0, %v2065_v1  ;;  %1751 = vmatpush3.bf16.msra.mxu0 %v2255_v2 }
0x1395   :  { %1752 = vmatprep.subr.bf16.mxu0 %v2065_v1 }
0x1398   :  { %1753 = vmatpush3.bf16.msra.mxu0 %v2258_v26 }
0x1399   :  { %1766 = vmatprep.subr.bf16.mxu0 %v2065_v1 }
0x139b   :  { %1755 = vmatmul.mubr.bf16.vlgmr.msra.gmra.mrb[20].mxu0 %v2067_v5 }
0x139c   :  { %1767 = vmatpush3.bf16.msra.mxu0 %v2255_v2  ;;  %1770 = vmatprep.mubr.msk.bf16.mxu0 %vm2066_vm0, %v2065_v1 }
0x139d   :  { %1768 = vmatprep.subr.bf16.mxu0 %v2065_v1 }
0x13a0   :  { %1769 = vmatpush3.bf16.msra.mxu0 %v2258_v26 }
0x13a1   :  { %1782 = vmatprep.subr.bf16.mxu0 %v2065_v1 }
0x1466   :  { %v735_v0 = vpop.f32.mrb[16].mxu0 }
0x1467   :  { %v742_v3 = vrot.slane %v735_v0, 2  ;;  %v1740_v6 = vpop.f32.mrb[17].mxu0 }
0x1468   :  { %v738_v8 = vpop.f32.mrb[18].mxu0 }
0x1469   :  { %v744_v9 = vadd.f32 %v742_v3, %v2157_v16  ;;  %v1741_v11 = vpop.f32.mrb[19].mxu0  ;;  %v1836_v16 = vld [vmem:[#allocation6 + $0x18] sm:$0xff]  }
0x146a   :  { %1743 = vmatpush3.bf16.msra.mxu1 %v1836_v16 }
0x146b   :  { %1898 = vtanh.f32 %v744_v9  ;;  %v1590_v13 = vmul.f32 -1.442695, %v744_v9  ;;  %1744 = vmatprep.subr.bf16.mxu1 %v2065_v1 }
0x146d   :  { %1900 = vpow2.f32 %v1590_v13 }
0x146e   :  { %1745 = vmatpush3.bf16.msra.mxu1 %v1838_v25  ;;  %v891_v5 = vpop.f32.mrb[20].mxu0 }
0x146f   :  { %1758 = vmatprep.subr.bf16.mxu1 %v2065_v1  ;;  %v1756_v31 = vpop.f32.mrb[21].mxu0 }
0x1470   :  { %v894_v32 = vpop.f32.mrb[22].mxu0 }
0x1471   :  { %v1757_v33 = vpop.f32.mrb[23].mxu0 }
0x1475   :  { %v1899_v12 = vpop.eup %1898 }
0x1476   :  { %757 = vrot.lane.b32.xlu0 %v1899_v12, %s2068_s1 }
0x1477   :  { %v1901_v15 = vpop.eup %1900 }
0x1478   :  { %v748_v17 = vadd.f32 1.0, %v1901_v15 }
0x147a   :  { %1902 = vrcp.f32 %v748_v17 }
0x1484   :  { %v1903_v18 = vpop.eup %1902 }
0x1485   :  { %v755_v22 = vmul.f32 %v1903_v18, %v753_v21 }
0x14e8   :  { %v758_v19 = vpop.permute.xlu0 %757 }
0x14e9   :  { %v760_v20 = vmul.f32 %v1903_v18, %v758_v19 }
0x14eb   :  { %762 = vrot.lane.b32.xlu1 %v760_v20, %s2068_s1 }
0x155d   :  { %v763_v23 = vpop.permute.xlu1 %762 }
0x155e   :  { %v765_v24 = vadd.f32 %v763_v23, %v755_v22 }
0x1560   :  { %1904 = vtanh.f32 %v765_v24 }
0x156a   :  { %v1905_v27 = vpop.eup %1904 }
0x156b   :  { %768 = vrot.lane.b32.xlu0 %v1905_v27, %s2068_s1 }
0x15dd   :  { %v769_v4 = vpop.permute.xlu0 %768 }
0x15de   :  { %v771_v28 = vmul.f32 %v1903_v18, %v769_v4 }
0x15e0   :  { %v780_v29 = vsel %vm776_vm5, %v779_v61, %v771_v28 }
0x15e1   :  { %v781_v30 = vpack.c.bf16 %v780_v29, %v2207_v50  ;;  %v73_v50 = vld [vmem:[#allocation6 + $0x40] sm:$0x1] }
0x15e2   :  { %v74_v35 = vunpack.c.l.bf16 %v73_v50 }
0x15e3   :  { %787 = vrot.lane.b32.xlu1 %v781_v30, %s2061_s22 }
0x15e4   :  { %v785_v36 = vrot.slane %v74_v35, %v2152_v10 }
0x1655   :  { %v788_v34 = vpop.permute.xlu1 %787 }
0x1656   :  { %1747 = vmatmul.mubr.msk.bf16.vlgmr.msra.gmra.mrb[16].mxu1 %vm155_vm2, %v788_v34 }
0x1657   :  { %1759 = vmatpush3.bf16.msra.mxu1 %v2255_v2  ;;  %1762 = vmatprep.mubr.msk.bf16.mxu1 %vm2066_vm0, %v2065_v1 }
0x1658   :  { %1760 = vmatprep.subr.bf16.mxu1 %v2065_v1 }
0x165b   :  { %1761 = vmatpush3.bf16.msra.mxu1 %v2258_v26 }
0x165c   :  { %1774 = vmatprep.subr.bf16.mxu1 %v2065_v1 }
0x1729   :  { %v838_v37 = vpop.f32.mrb[16].mxu1 }
0x172a   :  { %v2284_v38 = vadd.f32 %v838_v37, %v785_v36  ;;  %v1748_v39 = vpop.f32.mrb[17].mxu1 }
0x172b   :  { %v841_v40 = vpop.f32.mrb[18].mxu1 }
0x172c   :  { %v897_v41 = vadd.f32 %v891_v5, %v2284_v38  ;;  %v2287_v42 = vadd.f32 %v841_v40, %v785_v36  ;;  %v1749_v43 = vpop.f32.mrb[19].mxu1 }
0x172e   :  { %1906 = vtanh.f32 %v897_v41  ;;  %v1596_v45 = vmul.f32 -1.442695, %v897_v41 }
0x1730   :  { %1908 = vpow2.f32 %v1596_v45 }
0x1738   :  { %v1907_v44 = vpop.eup %1906 }
0x1739   :  { %907 = vrot.lane.b32.xlu0 %v1907_v44, %s2068_s1 }
0x173a   :  { %v1909_v46 = vpop.eup %1908 }
0x173b   :  { %v901_v14 = vadd.f32 1.0, %v1909_v46 }
0x173d   :  { %1910 = vrcp.f32 %v901_v14 }
0x1747   :  { %v1911_v47 = vpop.eup %1910 }
0x1748   :  { %v905_v51 = vmul.f32 0.0, %v1911_v47 }
0x17ab   :  { %v908_v48 = vpop.permute.xlu0 %907 }
0x17ac   :  { %v910_v49 = vmul.f32 %v1911_v47, %v908_v48 }
0x17ae   :  { %912 = vrot.lane.b32.xlu1 %v910_v49, %s2068_s1 }
0x1820   :  { %v913_v52 = vpop.permute.xlu1 %912 }
0x1821   :  { %v915_v53 = vadd.f32 %v913_v52, %v905_v51 }
0x1823   :  { %1912 = vtanh.f32 %v915_v53  ;;  %v981_v15 = vrot.slane %v915_v53, 6 }
0x182d   :  { %v1913_v54 = vpop.eup %1912 }
0x182e   :  { %918 = vrot.lane.b32.xlu0 %v1913_v54, %s2068_s1 }
0x18a0   :  { %v919_v55 = vpop.permute.xlu0 %918 }
0x18a1   :  { %v921_v56 = vmul.f32 %v1911_v47, %v919_v55 }
0x18a3   :  { %v922_v57 = vpack.c.bf16 %v921_v56, %v921_v56 }
0x18a5   :  { %924 = vrot.lane.b32.xlu1 %v922_v57, %s2061_s22 }
0x1917   :  { %v925_v58 = vpop.permute.xlu1 %924 }
0x1918   :  { %1763 = vmatmul.mubr.msk.bf16.vlgmr.msra.gmra.mrb[20].mxu1 %vm155_vm2, %v925_v58 }
0x1919   :  { %1775 = vmatpush3.bf16.msra.mxu1 %v2255_v2  ;;  %1778 = vmatprep.mubr.msk.bf16.mxu1 %vm2066_vm0, %v2065_v1 }
0x191a   :  { %1776 = vmatprep.subr.bf16.mxu1 %v2065_v1 }
0x191d   :  { %1777 = vmatpush3.bf16.msra.mxu1 %v2258_v26 }
0x191e   :  { %1790 = vmatprep.subr.bf16.mxu1 %v2065_v1 }
0x19eb   :  { %v963_v59 = vpop.f32.mrb[20].mxu1 }
0x19ec   :  { %v970_v60 = vrot.slane %v963_v59, 6  ;;  %v1764_v61 = vpop.f32.mrb[21].mxu1 }
0x19ed   :  { %v966_v62 = vpop.f32.mrb[22].mxu1 }
0x19ee   :  { %v972_v63 = vadd.f32 %v970_v60, %v2284_v38  ;;  %v1765_v0 = vpop.f32.mrb[23].mxu1 }
0x19f0   :  { %1914 = vtanh.f32 %v972_v63  ;;  %v1598_v6 = vmul.f32 -1.442695, %v972_v63 }
0x19f2   :  { %1916 = vpow2.f32 %v1598_v6 }
0x19fa   :  { %v1915_v3 = vpop.eup %1914 }
0x19fb   :  { %985 = vrot.lane.b32.xlu0 %v1915_v3, %s2068_s1 }
0x19fc   :  { %v1917_v8 = vpop.eup %1916 }
0x19fd   :  { %v976_v9 = vadd.f32 1.0, %v1917_v8 }
0x19ff   :  { %1918 = vrcp.f32 %v976_v9 }
0x1a09   :  { %v1919_v11 = vpop.eup %1918 }
0x1a0a   :  { %v983_v17 = vmul.f32 %v1919_v11, %v981_v15 }
0x1a6d   :  { %v986_v12 = vpop.permute.xlu0 %985 }
0x1a6e   :  { %v988_v13 = vmul.f32 %v1919_v11, %v986_v12 }
0x1a70   :  { %990 = vrot.lane.b32.xlu1 %v988_v13, %s2068_s1 }
0x1ae2   :  { %v991_v18 = vpop.permute.xlu1 %990 }
0x1ae3   :  { %v993_v19 = vadd.f32 %v991_v18, %v983_v17 }
0x1ae5   :  { %1920 = vtanh.f32 %v993_v19  ;;  %v1060_v36 = vrot.slane %v993_v19, 6 }
0x1aef   :  { %v1921_v20 = vpop.eup %1920 }
0x1af0   :  { %996 = vrot.lane.b32.xlu0 %v1921_v20, %s2068_s1 }
0x1b62   :  { %v997_v21 = vpop.permute.xlu0 %996 }
0x1b63   :  { %v999_v22 = vmul.f32 %v1919_v11, %v997_v21 }
0x1b65   :  { %v1000_v23 = vpack.c.bf16 %v999_v22, %v999_v22 }
0x1b67   :  { %v1002_v24 = vrot.slane %v1000_v23, 1 }
0x1b69   :  { %1003 = vrot.lane.b32.xlu1 %v1002_v24, %s2061_s22 }
0x1bdb   :  { %v1004_v16 = vpop.permute.xlu1 %1003 }
0x1bdc   :  { %1771 = vmatmul.mubr.msk.bf16.vlgmr.msra.gmra.mrb[24].mxu0 %vm155_vm2, %v1004_v16 }
0x1bdd   :  { %1783 = vmatpush3.bf16.msra.mxu0 %v2255_v2  ;;  %1786 = vmatprep.mubr.msk.bf16.mxu0 %vm2066_vm0, %v2065_v1 }
0x1bde   :  { %1784 = vmatprep.subr.bf16.mxu0 %v2065_v1 }
0x1be1   :  { %1785 = vmatpush3.bf16.msra.mxu0 %v2258_v26 }
0x1be2   :  { %1798 = vmatprep.subr.bf16.mxu0 %v2065_v1 }
0x1caf   :  { %v1042_v25 = vpop.f32.mrb[24].mxu0 }
0x1cb0   :  { %v1049_v27 = vrot.slane %v1042_v25, 4  ;;  %v1772_v4 = vpop.f32.mrb[25].mxu0 }
0x1cb1   :  { %v1045_v28 = vpop.f32.mrb[26].mxu0 }
0x1cb2   :  { %v1051_v29 = vadd.f32 %v1049_v27, %v2284_v38  ;;  %v1773_v30 = vpop.f32.mrb[27].mxu0 }
0x1cb4   :  { %1922 = vtanh.f32 %v1051_v29  ;;  %v1600_v31 = vmul.f32 -1.442695, %v1051_v29 }
0x1cb6   :  { %1924 = vpow2.f32 %v1600_v31 }
0x1cbe   :  { %v1923_v5 = vpop.eup %1922 }
0x1cbf   :  { %1064 = vrot.lane.b32.xlu0 %v1923_v5, %s2068_s1 }
0x1cc0   :  { %v1925_v32 = vpop.eup %1924 }
0x1cc1   :  { %v1055_v33 = vadd.f32 1.0, %v1925_v32 }
0x1cc3   :  { %1926 = vrcp.f32 %v1055_v33 }
0x1ccd   :  { %v1927_v34 = vpop.eup %1926 }
0x1cce   :  { %v1062_v37 = vmul.f32 %v1927_v34, %v1060_v36 }
0x1d31   :  { %v1065_v50 = vpop.permute.xlu0 %1064 }
0x1d32   :  { %v1067_v35 = vmul.f32 %v1927_v34, %v1065_v50 }
0x1d34   :  { %1069 = vrot.lane.b32.xlu1 %v1067_v35, %s2068_s1 }
0x1da6   :  { %v1070_v39 = vpop.permute.xlu1 %1069 }
0x1da7   :  { %v1072_v40 = vadd.f32 %v1070_v39, %v1062_v37 }
0x1da9   :  { %1928 = vtanh.f32 %v1072_v40  ;;  %v1139_v61 = vrot.slane %v1072_v40, 6 }
0x1db3   :  { %v1929_v41 = vpop.eup %1928 }
0x1db4   :  { %1075 = vrot.lane.b32.xlu0 %v1929_v41, %s2068_s1 }
0x1e26   :  { %v1076_v43 = vpop.permute.xlu0 %1075 }
0x1e27   :  { %v1078_v44 = vmul.f32 %v1927_v34, %v1076_v43 }
0x1e29   :  { %v1079_v45 = vpack.c.bf16 %v1078_v44, %v1078_v44 }
0x1e2b   :  { %v1081_v46 = vrot.slane %v1079_v45, 2 }
0x1e2d   :  { %1082 = vrot.lane.b32.xlu1 %v1081_v46, %s2061_s22 }
0x1e9f   :  { %v1083_v14 = vpop.permute.xlu1 %1082 }
0x1ea0   :  { %1779 = vmatmul.mubr.msk.bf16.vlgmr.msra.gmra.mrb[24].mxu1 %vm155_vm2, %v1083_v14 }
0x1ea1   :  { %1791 = vmatpush3.bf16.msra.mxu1 %v2255_v2  ;;  %1794 = vmatprep.mubr.msk.bf16.mxu1 %vm2066_vm0, %v2065_v1 }
0x1ea2   :  { %1792 = vmatprep.subr.bf16.mxu1 %v2065_v1 }
0x1ea5   :  { %1793 = vmatpush3.bf16.msra.mxu1 %v2258_v26 }
0x1ea6   :  { %1806 = vmatprep.subr.bf16.mxu1 %v2065_v1 }
0x1f73   :  { %v1121_v47 = vpop.f32.mrb[24].mxu1 }
0x1f74   :  { %v1128_v48 = vrot.slane %v1121_v47, 2  ;;  %v1780_v49 = vpop.f32.mrb[25].mxu1 }
0x1f75   :  { %v1124_v51 = vpop.f32.mrb[26].mxu1 }
0x1f76   :  { %v1130_v52 = vadd.f32 %v1128_v48, %v2284_v38  ;;  %v1781_v53 = vpop.f32.mrb[27].mxu1 }
0x1f78   :  { %1930 = vtanh.f32 %v1130_v52  ;;  %v1602_v55 = vmul.f32 -1.442695, %v1130_v52 }
0x1f7a   :  { %1932 = vpow2.f32 %v1602_v55 }
0x1f82   :  { %v1931_v54 = vpop.eup %1930 }
0x1f83   :  { %1143 = vrot.lane.b32.xlu0 %v1931_v54, %s2068_s1 }
0x1f84   :  { %v1933_v56 = vpop.eup %1932 }
0x1f85   :  { %v1134_v57 = vadd.f32 1.0, %v1933_v56 }
0x1f87   :  { %1934 = vrcp.f32 %v1134_v57 }
0x1f91   :  { %v1935_v58 = vpop.eup %1934 }
0x1f92   :  { %v1141_v62 = vmul.f32 %v1935_v58, %v1139_v61 }
0x1ff5   :  { %v1144_v59 = vpop.permute.xlu0 %1143 }
0x1ff6   :  { %v1146_v60 = vmul.f32 %v1935_v58, %v1144_v59 }
0x1ff8   :  { %1148 = vrot.lane.b32.xlu1 %v1146_v60, %s2068_s1 }
0x206a   :  { %v1149_v63 = vpop.permute.xlu1 %1148 }
0x206b   :  { %v1151_v0 = vadd.f32 %v1149_v63, %v1141_v62 }
0x206d   :  { %1936 = vtanh.f32 %v1151_v0  ;;  %v1215_v25 = vrot.slane %v1151_v0, 6 }
0x2077   :  { %v1937_v38 = vpop.eup %1936 }
0x2078   :  { %1154 = vrot.lane.b32.xlu0 %v1937_v38, %s2068_s1 }
0x20ea   :  { %v1155_v3 = vpop.permute.xlu0 %1154 }
0x20eb   :  { %v1157_v6 = vmul.f32 %v1935_v58, %v1155_v3 }
0x20ed   :  { %v1158_v8 = vpack.c.bf16 %v1157_v6, %v1157_v6 }
0x20ef   :  { %v1160_v9 = vrot.slane %v1158_v8, 3 }
0x20f1   :  { %1161 = vrot.lane.b32.xlu1 %v1160_v9, %s2061_s22 }
0x2163   :  { %v1162_v11 = vpop.permute.xlu1 %1161 }
0x2164   :  { %1787 = vmatmul.mubr.msk.bf16.vlgmr.msra.gmra.mrb[28].mxu0 %vm155_vm2, %v1162_v11 }
0x2165   :  { %1799 = vmatpush3.bf16.msra.mxu0 %v2255_v2  ;;  %1802 = vmatprep.mubr.msk.bf16.mxu0 %vm2066_vm0, %v2065_v1 }
0x2166   :  { %1800 = vmatprep.subr.bf16.mxu0 %v2065_v1 }
0x2169   :  { %1801 = vmatpush3.bf16.msra.mxu0 %v2258_v26 }
0x216a   :  { %1814 = vmatprep.subr.bf16.mxu0 %v2065_v1 }
0x2237   :  { %v1200_v12 = vpop.f32.mrb[28].mxu0 }
0x2238   :  { %v1206_v13 = vadd.f32 %v1200_v12, %v2287_v42  ;;  %v1788_v15 = vpop.f32.mrb[29].mxu0 }
0x2239   :  { %v1203_v17 = vpop.f32.mrb[30].mxu0 }
0x223a   :  { %1938 = vtanh.f32 %v1206_v13  ;;  %v1789_v18 = vpop.f32.mrb[31].mxu0  ;;  %v1604_v20 = vmul.f32 -1.442695, %v1206_v13 }
0x223c   :  { %1940 = vpow2.f32 %v1604_v20 }
0x2244   :  { %v1939_v19 = vpop.eup %1938 }
0x2245   :  { %1219 = vrot.lane.b32.xlu0 %v1939_v19, %s2068_s1 }
0x2246   :  { %v1941_v21 = vpop.eup %1940 }
0x2247   :  { %v1210_v22 = vadd.f32 1.0, %v1941_v21 }
0x2249   :  { %1942 = vrcp.f32 %v1210_v22 }
0x2253   :  { %v1943_v23 = vpop.eup %1942 }
0x2254   :  { %v1217_v27 = vmul.f32 %v1943_v23, %v1215_v25 }
0x22b7   :  { %v1220_v24 = vpop.permute.xlu0 %1219 }
0x22b8   :  { %v1222_v16 = vmul.f32 %v1943_v23, %v1220_v24 }
0x22ba   :  { %1224 = vrot.lane.b32.xlu1 %v1222_v16, %s2068_s1 }
0x232c   :  { %v1225_v4 = vpop.permute.xlu1 %1224 }
0x232d   :  { %v1227_v28 = vadd.f32 %v1225_v4, %v1217_v27 }
0x232f   :  { %1944 = vtanh.f32 %v1227_v28 }
0x2339   :  { %v1945_v29 = vpop.eup %1944 }
0x233a   :  { %1230 = vrot.lane.b32.xlu0 %v1945_v29, %s2068_s1 }
0x23ac   :  { %v1231_v30 = vpop.permute.xlu0 %1230 }
0x23ad   :  { %v1233_v5 = vmul.f32 %v1943_v23, %v1231_v30 }
0x23af   :  { %v1234_v31 = vpack.c.bf16 %v1233_v5, %v1233_v5 }
0x23b1   :  { %1236 = vrot.lane.b32.xlu1 %v1234_v31, %s2061_s22 }
0x2423   :  { %v1237_v32 = vpop.permute.xlu1 %1236 }
0x2424   :  { %1795 = vmatmul.mubr.msk.bf16.vlgmr.msra.gmra.mrb[28].mxu1 %vm155_vm2, %v1237_v32 }
0x2425   :  { %1807 = vmatpush3.bf16.msra.mxu1 %v2255_v2  ;;  %1810 = vmatprep.mubr.msk.bf16.mxu1 %vm2066_vm0, %v2065_v1 }
0x2426   :  { %1808 = vmatprep.subr.bf16.mxu1 %v2065_v1 }
0x2429   :  { %1809 = vmatpush3.bf16.msra.mxu1 %v2258_v26  ;;  %v1293_v26 = vrot.slane %v1227_v28, 6 }
0x24f7   :  { %v1275_v33 = vpop.f32.mrb[28].mxu1 }
0x24f8   :  { %v1282_v34 = vrot.slane %v1275_v33, 6  ;;  %v1796_v50 = vpop.f32.mrb[29].mxu1 }
0x24f9   :  { %v1278_v35 = vpop.f32.mrb[30].mxu1 }
0x24fa   :  { %v1284_v36 = vadd.f32 %v1282_v34, %v2287_v42  ;;  %v1797_v37 = vpop.f32.mrb[31].mxu1  ;;  %v1841_v35 = vld [vmem:[#allocation6 + $0x50] sm:$0xff]  }
0x24fc   :  { %1946 = vtanh.f32 %v1284_v36  ;;  %v1606_v40 = vmul.f32 -1.442695, %v1284_v36 }
0x24fe   :  { %1948 = vpow2.f32 %v1606_v40 }
0x2506   :  { %v1947_v39 = vpop.eup %1946 }
0x2507   :  { %1297 = vrot.lane.b32.xlu0 %v1947_v39, %s2068_s1 }
0x2508   :  { %v1949_v2 = vpop.eup %1948 }
0x2509   :  { %v1288_v41 = vadd.f32 1.0, %v1949_v2 }
0x250b   :  { %1950 = vrcp.f32 %v1288_v41 }
0x2515   :  { %v1951_v43 = vpop.eup %1950 }
0x2516   :  { %v1295_v46 = vmul.f32 %v1951_v43, %v1293_v26  ;;  %v1478_v26 = vstv %s1611_s15 }
0x2579   :  { %v1298_v44 = vpop.permute.xlu0 %1297 }
0x257a   :  { %v1300_v45 = vmul.f32 %v1951_v43, %v1298_v44  ;;  %v1474_v44 = vstv %s1473_s14 }
0x257c   :  { %1302 = vrot.lane.b32.xlu1 %v1300_v45, %s2068_s1  ;;  %v1475_v45 = vsel %vm1472_vm6, %v1474_v44, 0.0 }
0x25ee   :  { %v1303_v14 = vpop.permute.xlu1 %1302 }
0x25ef   :  { %v1305_v47 = vadd.f32 %v1303_v14, %v1295_v46  ;;  %v1479_v46 = vsel %vm1476_vm7, %v1478_v26, %v1475_v45 }
0x25f1   :  { %1952 = vtanh.f32 %v1305_v47  ;;  %v1372_v8 = vrot.slane %v1305_v47, 6 }
0x25fb   :  { %v1953_v48 = vpop.eup %1952 }
0x25fc   :  { %1308 = vrot.lane.b32.xlu0 %v1953_v48, %s2068_s1 }
0x266e   :  { %v1309_v49 = vpop.permute.xlu0 %1308 }
0x266f   :  { %v1311_v51 = vmul.f32 %v1951_v43, %v1309_v49  ;;  %v79_v43 = vld [vmem:[#allocation6 + $0x58] sm:$0x1] }
0x2671   :  { %v1312_v52 = vpack.c.bf16 %v1311_v51, %v1311_v51 }
0x2673   :  { %v1314_v53 = vrot.slane %v1312_v52, 1 }
0x2675   :  { %1315 = vrot.lane.b32.xlu1 %v1314_v53, %s2061_s22 }
0x26e7   :  { %v1316_v54 = vpop.permute.xlu1 %1315 }
0x26e8   :  { %1803 = vmatmul.mubr.msk.bf16.vlgmr.msra.gmra.mrb[32].mxu0 %vm155_vm2, %v1316_v54 }
0x26e9   :  { %1818 = vmatprep.mubr.msk.bf16.mxu0 %vm2066_vm0, %v2065_v1 }
0x27bb   :  { %v1354_v55 = vpop.f32.mrb[32].mxu0 }
0x27bc   :  { %v1361_v56 = vrot.slane %v1354_v55, 4  ;;  %v1804_v57 = vpop.f32.mrb[33].mxu0 }
0x27bd   :  { %v1357_v58 = vpop.f32.mrb[34].mxu0 }
0x27be   :  { %v1363_v59 = vadd.f32 %v1361_v56, %v2287_v42  ;;  %v1805_v60 = vpop.f32.mrb[35].mxu0 }
0x27c0   :  { %1954 = vtanh.f32 %v1363_v59  ;;  %v1608_v62 = vmul.f32 -1.442695, %v1363_v59 }
0x27c2   :  { %1956 = vpow2.f32 %v1608_v62 }
0x27ca   :  { %v1955_v61 = vpop.eup %1954 }
0x27cb   :  { %1376 = vrot.lane.b32.xlu0 %v1955_v61, %s2068_s1 }
0x27cc   :  { %v1957_v63 = vpop.eup %1956 }
0x27cd   :  { %v1367_v0 = vadd.f32 1.0, %v1957_v63 }
0x27cf   :  { %1958 = vrcp.f32 %v1367_v0 }
0x27d9   :  { %v1959_v38 = vpop.eup %1958 }
0x27da   :  { %v1374_v9 = vmul.f32 %v1959_v38, %v1372_v8 }
0x283d   :  { %v1377_v3 = vpop.permute.xlu0 %1376 }
0x283e   :  { %v1379_v6 = vmul.f32 %v1959_v38, %v1377_v3 }
0x2840   :  { %1381 = vrot.lane.b32.xlu1 %v1379_v6, %s2068_s1 }
0x28b2   :  { %v1382_v11 = vpop.permute.xlu1 %1381 }
0x28b3   :  { %v1384_v12 = vadd.f32 %v1382_v11, %v1374_v9 }
0x28b5   :  { %1960 = vtanh.f32 %v1384_v12  ;;  %v1451_v32 = vrot.slane %v1384_v12, 6 }
0x28bf   :  { %v1961_v13 = vpop.eup %1960 }
0x28c0   :  { %1387 = vrot.lane.b32.xlu0 %v1961_v13, %s2068_s1 }
0x2932   :  { %v1388_v15 = vpop.permute.xlu0 %1387 }
0x2933   :  { %v1390_v17 = vmul.f32 %v1959_v38, %v1388_v15 }
0x2935   :  { %v1391_v18 = vpack.c.bf16 %v1390_v17, %v1390_v17 }
0x2937   :  { %v1393_v19 = vrot.slane %v1391_v18, 2 }
0x2939   :  { %1394 = vrot.lane.b32.xlu1 %v1393_v19, %s2061_s22 }
0x29ab   :  { %v1395_v20 = vpop.permute.xlu1 %1394 }
0x29ac   :  { %1811 = vmatmul.mubr.msk.bf16.vlgmr.msra.gmra.mrb[32].mxu1 %vm155_vm2, %v1395_v20 }
0x2a7f   :  { %v1433_v21 = vpop.f32.mrb[32].mxu1 }
0x2a80   :  { %v1440_v22 = vrot.slane %v1433_v21, 2  ;;  %v1812_v23 = vpop.f32.mrb[33].mxu1 }
0x2a81   :  { %v1436_v24 = vpop.f32.mrb[34].mxu1 }
0x2a82   :  { %v1442_v16 = vadd.f32 %v1440_v22, %v2287_v42  ;;  %v1813_v25 = vpop.f32.mrb[35].mxu1  ;;  %v1840_v42 = vld [vmem:[#allocation6 + $0x48] sm:$0xff]  }
0x2a83   :  { %1815 = vmatpush3.bf16.msra.mxu0 %v1840_v42 }
0x2a84   :  { %1962 = vtanh.f32 %v1442_v16  ;;  %v1610_v4 = vmul.f32 -1.442695, %v1442_v16  ;;  %1816 = vmatprep.subr.bf16.mxu0 %v2065_v1  ;;  %v80_v1 = vunpack.c.l.bf16 %v79_v43 }
0x2a86   :  { %1964 = vpow2.f32 %v1610_v4  ;;  %v1544_v14 = vrot.slane %v80_v1, %v2152_v10 }
0x2a87   :  { %1817 = vmatpush3.bf16.msra.mxu0 %v1841_v35 }
0x2a8e   :  { %v1963_v27 = vpop.eup %1962 }
0x2a8f   :  { %1455 = vrot.lane.b32.xlu0 %v1963_v27, %s2068_s1 }
0x2a90   :  { %v1965_v28 = vpop.eup %1964 }
0x2a91   :  { %v1446_v29 = vadd.f32 1.0, %v1965_v28 }
0x2a93   :  { %1966 = vrcp.f32 %v1446_v29 }
0x2a9d   :  { %v1967_v30 = vpop.eup %1966 }
0x2a9e   :  { %v1453_v33 = vmul.f32 %v1967_v30, %v1451_v32 }
0x2b01   :  { %v1456_v5 = vpop.permute.xlu0 %1455 }
0x2b02   :  { %v1458_v31 = vmul.f32 %v1967_v30, %v1456_v5 }
0x2b04   :  { %1460 = vrot.lane.b32.xlu1 %v1458_v31, %s2068_s1 }
0x2b76   :  { %v1461_v34 = vpop.permute.xlu1 %1460 }
0x2b77   :  { %v1463_v50 = vadd.f32 %v1461_v34, %v1453_v33 }
0x2b79   :  { %1968 = vtanh.f32 %v1463_v50 }
0x2b83   :  { %v1969_v36 = vpop.eup %1968 }
0x2b84   :  { %1466 = vrot.lane.b32.xlu0 %v1969_v36, %s2068_s1 }
0x2bf6   :  { %v1467_v37 = vpop.permute.xlu0 %1466 }
0x2bf7   :  { %v1469_v39 = vmul.f32 %v1967_v30, %v1467_v37 }
0x2bf9   :  { %v1480_v40 = vpack.c.bf16 %v1469_v39, %v1469_v39 }
0x2bfb   :  { %v1482_v2 = vrot.slane %v1480_v40, 3 }
0x2bfd   :  { %1483 = vrot.lane.b32.xlu1 %v1482_v2, %s2061_s22 }
0x2c6f   :  { %v1484_v41 = vpop.permute.xlu1 %1483 }
0x2c70   :  { %1819 = vmatmul.mubr.msk.bf16.vlgmr.msra.gmra.mrb[36].mxu0 %vm155_vm2, %v1484_v41 }
0x2d43   :  { %v1534_v47 = vpop.f32.mrb[36].mxu0 }
0x2d44   :  { %v1540_v48 = vmul.f32 %v1534_v47, %v1479_v46  ;;  %v1820_v49 = vpop.f32.mrb[37].mxu0 }
0x2d45   :  { %v1537_v51 = vpop.f32.mrb[38].mxu0 }
0x2d46   :  { %v1545_v52 = vadd.f32 %v1544_v14, %v1540_v48  ;;  %v1821_v53 = vpop.f32.mrb[39].mxu0 }
0x2d48   :  { %v1615_v54 = vmul.f32 -1.442695, %v1545_v52 }
0x2d4a   :  { %1970 = vpow2.f32 %v1615_v54 }
0x2d54   :  { %v1971_v55 = vpop.eup %1970 }
0x2d55   :  { %v1549_v56 = vadd.f32 1.0, %v1971_v55 }
0x2d57   :  { %1972 = vrcp.f32 %v1549_v56 }
0x2d61   :  { %v1973_v7 = vpop.eup %1972 }
0x2d62   :  { %1553 = vst.msk [vmem:[#allocation9] sm:$0x3] %vm1552_vm8, %v1973_v7 }
0x2d63   :  { %2041 = shalt.err (!%p2038_p11)
}
0x2d64   :  { %s2042_s21 = scalar_lea.hbm %s2386_s3, 32 }
0x2d65   :  { %p2043_p12 = scmp.ne.s32.totalorder %s2386_s3, %s2042_s21  ;;  %p2046_p13 = scmp.lt.u32.totalorder %s2042_s21, %s2386_s3 }
0x2d67   :  { %p2048_p0 = pnand %p2046_p13, %p2043_p12 }
0x2d69   :  { %2051 = shalt.err (!%p2048_p0)
}
0x2d6a   :  { %1563 = dma.vmem_to_hbm [thread:$0]  %s1561_s17, 32, %s2386_s3, [#allocation4]  }
0x2d6b   :  { %2058 = dma.done.wait [#allocation4], 32  }
0x2d6c   :  { %2059 = vsyncadd [#allocation4], 4294967264 }
0x2d6d   :  { %1567 = vsyncpa [#allocation3], 1 }
0x2d6e   :  { %1568 = vsyncpa [#allocation7], 1 }
0x2d6f   :  { %1569 = vsyncpa [#allocation4], 1 }
0x2d70   :  { %1570 = vsyncpa [#allocation5], 1 }

</bundles_post_ra>
